<compile_context>
chip_gen: v5e
topology: v5e:2x2
jax: 0.10.0
libtpu: 0.0.40
codegen_flags: <defaults>
</compile_context>

<pallas_src>
import math
from functools import partial

import jax
import jax.numpy as jnp
from jax.experimental import pallas as pl
from jax.experimental.pallas import tpu as pltpu

# ---------------- model / test configuration ----------------
S = 8            # per-batch (flattened varlen) sequence length
B = 2            # batch
D = 64           # embed dim
H = 2            # num attention heads
DH = D // H      # head dim
MLP_H = 128      # mlp hidden dim
EPS = 1e-6


# ---------------- fused Pallas kernel (single invocation, whole slab) -------
def vision_block_kernel(x_ref, comb_ref, cos_ref, sin_ref,
                        wqkv_ref, bqkv_ref, wproj_ref, bproj_ref,
                        wgu_ref, bgu_ref, wd_ref, bd_ref,
                        y_ref, *, num_heads, mlp_hidden):
    BS_, D_ = x_ref.shape
    H_ = num_heads
    DH_ = D_ // H_
    half = DH_ // 2
    scale = 1.0 / math.sqrt(DH_)

    def norm(t):  # LayerNorm without affine (affine folded into weights), f32
        mu = jnp.mean(t, axis=-1, keepdims=True)
        var = jnp.mean(jnp.square(t - mu), axis=-1, keepdims=True)
        return (t - mu) * jax.lax.rsqrt(var + EPS)

    x = x_ref[...]                                        # (BS, D) f32

    # ---- LN1 + QKV projection (bf16 MXU, f32 accumulate) ----
    xn = norm(x).astype(jnp.bfloat16)
    qkv = jnp.dot(xn, wqkv_ref[...],
                  preferred_element_type=jnp.float32) + bqkv_ref[...]

    q = qkv[:, :D_].reshape(BS_, H_, DH_)                 # (BS, H, DH)
    k = qkv[:, D_:2 * D_].reshape(BS_, H_, DH_)
    v = qkv[:, 2 * D_:].reshape(BS_, H_, DH_)

    # ---- rotary embedding (f32 VPU); sign of rotate-half is in sin table ----
    cos = cos_ref[...]                                    # (BS, 1, DH)
    sin = sin_ref[...]                                    # (BS, 1, DH) = [-sin, sin]

    def rope(t):
        rot = jnp.concatenate([t[..., half:], t[..., :half]], axis=-1)
        return t * cos + rot * sin

    q = rope(q)
    k = rope(k)

    # ---- block-diagonal (batch x varlen-segment) attention, batched heads ----
    qh = jnp.transpose(q, (1, 0, 2)).astype(jnp.bfloat16)  # (H, BS, DH)
    kh = jnp.transpose(k, (1, 0, 2)).astype(jnp.bfloat16)
    vh = jnp.transpose(v, (1, 0, 2)).astype(jnp.bfloat16)

    s = jnp.einsum("hqd,hkd->hqk", qh, kh,
                   preferred_element_type=jnp.float32) * scale   # (H, BS, BS)

    seg = comb_ref[...]                                   # (1, BS) combined ids
    mask = seg[:, :, None] == seg[:, None, :]             # (1, BS, BS)
    s = jnp.where(mask, s, -1e9)
    s = s - jnp.max(s, axis=-1, keepdims=True)
    p = jnp.exp(s)
    p = p * pl.reciprocal(jnp.sum(p, axis=-1, keepdims=True), approx=True)

    ctx = jnp.einsum("hqk,hkd->hqd", p.astype(jnp.bfloat16), vh,
                     preferred_element_type=jnp.float32)  # (H, BS, DH)
    ctx = jnp.transpose(ctx, (1, 0, 2)).reshape(BS_, D_)

    attn_out = jnp.dot(ctx.astype(jnp.bfloat16), wproj_ref[...],
                       preferred_element_type=jnp.float32) + bproj_ref[...]
    h = x + attn_out

    # ---- MLP branch: LN2 + fused gate/up matmul + SiLU*up + down ----
    hn = norm(h).astype(jnp.bfloat16)
    gu = jnp.dot(hn, wgu_ref[...],
                 preferred_element_type=jnp.float32) + bgu_ref[...]
    g = gu[:, :mlp_hidden]
    u = gu[:, mlp_hidden:]
    m = (g * jax.nn.sigmoid(g)) * u                       # SiLU(gate) * up, f32
    d = jnp.dot(m.astype(jnp.bfloat16), wd_ref[...],
                preferred_element_type=jnp.float32) + bd_ref[...]
    y_ref[...] = h + d


def _full_spec(a):
    idx = (0,) * a.ndim
    return pl.BlockSpec(a.shape, lambda: idx)


# ---------------- wrapper / glue (all layout + weight prep in XLA) ----------
def qwen25_vision_block(x, params, cu_seqlens, rotary_pos_emb):
    S_, B_, D_ = x.shape
    BS = B_ * S_
    nseg = cu_seqlens.shape[0] - 1

    # Combined (batch, segment) id per b-major row: block-diagonal mask across
    # both batch and varlen segments with a single O(B*S) int32 vector.
    pos = jnp.arange(S_)
    seg = jnp.searchsorted(cu_seqlens[1:], pos, side="right").astype(jnp.int32)
    comb = (jnp.arange(B_, dtype=jnp.int32)[:, None] * nseg
            + seg[None, :]).reshape(1, BS)

    # Rotary tables: duplicated halves, rotate-half sign folded into sin,
    # tiled over batch (b-major rows), shaped for (BS, H, DH) broadcast.
    cos = jnp.cos(rotary_pos_emb).astype(jnp.float32)      # (S, DH/2)
    sin = jnp.sin(rotary_pos_emb).astype(jnp.float32)
    cos_full = jnp.concatenate([cos, cos], axis=-1)        # (S, DH)
    sin_signed = jnp.concatenate([-sin, sin], axis=-1)     # sign folded in
    cos_b = jnp.tile(cos_full, (B_, 1)).reshape(BS, 1, DH)
    sin_b = jnp.tile(sin_signed, (B_, 1)).reshape(BS, 1, DH)

    # Fold LayerNorm affines into downstream projections (done once in XLA).
    wqkv_eff = params["wqkv"] * params["ln1w"].reshape(D_, 1)
    bqkv_eff = params["bqkv"] + params["ln1b"] @ params["wqkv"]

    wgu = jnp.concatenate([params["wg"], params["wu"]], axis=1)   # (D, 2*MLP_H)
    bgu = jnp.concatenate([params["bg"], params["bu"]], axis=1)
    wgu_eff = wgu * params["ln2w"].reshape(D_, 1)
    bgu_eff = bgu + params["ln2b"] @ wgu

    # Layout plumbing in XLA: (S, B, D) -> (B*S, D), b-major rows.
    x_flat = jnp.transpose(x, (1, 0, 2)).reshape(BS, D_)

    bf = lambda a: a.astype(jnp.bfloat16)
    inputs = (x_flat, comb, cos_b, sin_b,
              bf(wqkv_eff), bqkv_eff,
              bf(params["wproj"]), params["bproj"],
              bf(wgu_eff), bgu_eff,
              bf(params["wd"]), params["bd"])

    y_flat = pl.pallas_call(
        partial(vision_block_kernel, num_heads=H, mlp_hidden=MLP_H),
        out_shape=jax.ShapeDtypeStruct((BS, D_), jnp.float32),
        in_specs=[_full_spec(a) for a in inputs],
        out_specs=pl.BlockSpec((BS, D_), lambda: (0, 0)),
    )(*inputs)

    return jnp.transpose(y_flat.reshape(B_, S_, D_), (1, 0, 2))


# ---------------- pure-JAX reference (mirrors the torch forward) ------------
def reference_block(x, p, cu_seqlens, rotary_pos_emb):
    S_, B_, D_ = x.shape
    pos = jnp.arange(S_)
    seg = jnp.searchsorted(cu_seqlens[1:], pos, side="right")
    bias = jnp.where(seg[:, None] == seg[None, :], 0.0, -1e9).astype(jnp.float32)
    cos = jnp.concatenate([jnp.cos(rotary_pos_emb)] * 2, axis=-1)
    sin = jnp.concatenate([jnp.sin(rotary_pos_emb)] * 2, axis=-1)

    def ln(v, w, b):
        mu = v.mean(-1, keepdims=True)
        var = ((v - mu) ** 2).mean(-1, keepdims=True)
        return (v - mu) / jnp.sqrt(var + EPS) * w + b

    # attention branch
    xn = ln(x, p["ln1w"], p["ln1b"])
    qkv = jnp.einsum("sbd,de->sbe", xn, p["wqkv"]) + p["bqkv"]
    q, k, v = jnp.split(qkv, 3, axis=-1)

    def to_bshd(t):
        return t.reshape(S_, B_, H, DH).transpose(1, 0, 2, 3)

    q, k, v = map(to_bshd, (q, k, v))

    def rope(t):
        t1, t2 = t[..., :DH // 2], t[..., DH // 2:]
        rot = jnp.concatenate([-t2, t1], axis=-1)
        return t * cos[None, :, None, :] + rot * sin[None, :, None, :]

    q = rope(q)
    k = rope(k)
    s = jnp.einsum("bqhd,bkhd->bhqk", q, k) / math.sqrt(DH) + bias[None, None]
    pa = jax.nn.softmax(s, axis=-1)
    o = jnp.einsum("bhqk,bkhd->bqhd", pa, v)
    o = o.transpose(1, 0, 2, 3).reshape(S_, B_, D_)
    o = jnp.einsum("sbd,de->sbe", o, p["wproj"]) + p["bproj"]
    x = x + o

    # mlp branch
    xn = ln(x, p["ln2w"], p["ln2b"])
    g = jnp.einsum("sbd,dh->sbh", xn, p["wg"]) + p["bg"]
    u = jnp.einsum("sbd,dh->sbh", xn, p["wu"]) + p["bu"]
    d = jnp.einsum("sbh,hd->sbd", jax.nn.silu(g) * u, p["wd"]) + p["bd"]
    return x + d


# ---------------- main ----------------
if __name__ == "__main__":
    key = jax.random.PRNGKey(0)
    ks = jax.random.split(key, 16)

    def w(k, shape, scale=0.02):
        return (scale * jax.random.normal(k, shape)).astype(jnp.float32)

    params = {
        "ln1w": (1.0 + w(ks[0], (1, D), 0.05)).astype(jnp.float32),
        "ln1b": w(ks[1], (1, D), 0.05),
        "ln2w": (1.0 + w(ks[2], (1, D), 0.05)).astype(jnp.float32),
        "ln2b": w(ks[3], (1, D), 0.05),
        "wqkv": w(ks[4], (D, 3 * D)),
        "bqkv": w(ks[5], (1, 3 * D)),
        "wproj": w(ks[6], (D, D)),
        "bproj": w(ks[7], (1, D)),
        "wg": w(ks[8], (D, MLP_H)),
        "bg": w(ks[9], (1, MLP_H)),
        "wu": w(ks[10], (D, MLP_H)),
        "bu": w(ks[11], (1, MLP_H)),
        "wd": w(ks[12], (MLP_H, D)),
        "bd": w(ks[13], (1, D)),
    }

    x = jax.random.normal(ks[14], (S, B, D), jnp.float32)
    rotary_pos_emb = jax.random.normal(ks[15], (S, DH // 2), jnp.float32)
    cu_seqlens = jnp.array([0, 4, 8], dtype=jnp.int32)   # two varlen segments

    out = qwen25_vision_block(x, params, cu_seqlens, rotary_pos_emb)
    out = jax.block_until_ready(out)

    ref = reference_block(x, params, cu_seqlens, rotary_pos_emb)
    assert out.shape == (S, B, D)
    assert bool(jnp.allclose(out, ref, atol=1e-2, rtol=1e-2)), "mismatch vs reference"

    print("KERNEL_OK")
</pallas_src>

<mosaic_0001>
module attributes {stable_mosaic.version = 11 : i64} {
  func.func @vision_block_kernel(%arg0: memref<16x64xf32, #tpu.memory_space<vmem>>, %arg1: memref<1x16xi32, #tpu.memory_space<vmem>>, %arg2: memref<16x1x32xf32, #tpu.memory_space<vmem>>, %arg3: memref<16x1x32xf32, #tpu.memory_space<vmem>>, %arg4: memref<64x192xbf16, #tpu.memory_space<vmem>>, %arg5: memref<1x192xf32, #tpu.memory_space<vmem>>, %arg6: memref<64x64xbf16, #tpu.memory_space<vmem>>, %arg7: memref<1x64xf32, #tpu.memory_space<vmem>>, %arg8: memref<64x256xbf16, #tpu.memory_space<vmem>>, %arg9: memref<1x256xf32, #tpu.memory_space<vmem>>, %arg10: memref<128x64xbf16, #tpu.memory_space<vmem>>, %arg11: memref<1x64xf32, #tpu.memory_space<vmem>>, %arg12: memref<16x64xf32, #tpu.memory_space<vmem>>) attributes {dimension_semantics = [], scalar_prefetch = 0 : i64, scratch_operands = 0 : i64, tpu.core_type = #tpu.core_type<tc>} {
    %c0 = arith.constant 0 : index
    %c0_0 = arith.constant 0 : index
    %0 = vector.load %arg0[%c0, %c0_0] : memref<16x64xf32, #tpu.memory_space<vmem>>, vector<16x64xf32>
    %cst = arith.constant dense<0.000000e+00> : vector<16xf32>
    %1 = vector.multi_reduction <add>, %0, %cst [1] : vector<16x64xf32> to vector<16xf32>
    %2 = vector.shape_cast %1 : vector<16xf32> to vector<16x1xf32>
    %cst_1 = arith.constant 6.400000e+01 : f32
    %3 = vector.broadcast %cst_1 : f32 to vector<16x1xf32>
    %4 = arith.divf %2, %3 : vector<16x1xf32>
    %5 = vector.broadcast %4 : vector<16x1xf32> to vector<16x64xf32>
    %6 = arith.subf %0, %5 : vector<16x64xf32>
    %7 = arith.mulf %6, %6 : vector<16x64xf32>
    %cst_2 = arith.constant dense<0.000000e+00> : vector<16xf32>
    %8 = vector.multi_reduction <add>, %7, %cst_2 [1] : vector<16x64xf32> to vector<16xf32>
    %9 = vector.shape_cast %8 : vector<16xf32> to vector<16x1xf32>
    %cst_3 = arith.constant 6.400000e+01 : f32
    %10 = vector.broadcast %cst_3 : f32 to vector<16x1xf32>
    %11 = arith.divf %9, %10 : vector<16x1xf32>
    %12 = vector.broadcast %4 : vector<16x1xf32> to vector<16x64xf32>
    %13 = arith.subf %0, %12 : vector<16x64xf32>
    %cst_4 = arith.constant 9.99999997E-7 : f32
    %14 = vector.broadcast %cst_4 : f32 to vector<16x1xf32>
    %15 = arith.addf %11, %14 : vector<16x1xf32>
    %16 = math.rsqrt %15 : vector<16x1xf32>
    %17 = vector.broadcast %16 : vector<16x1xf32> to vector<16x64xf32>
    %18 = arith.mulf %13, %17 : vector<16x64xf32>
    %19 = arith.truncf %18 : vector<16x64xf32> to vector<16x64xbf16>
    %c0_5 = arith.constant 0 : index
    %c0_6 = arith.constant 0 : index
    %20 = vector.load %arg4[%c0_5, %c0_6] : memref<64x192xbf16, #tpu.memory_space<vmem>>, vector<64x192xbf16>
    %cst_7 = arith.constant dense<0.000000e+00> : vector<16x192xf32>
    %21 = tpu.matmul %19, %20, %cst_7 {dimension_numbers = #tpu.dot_dimension_numbers<[1], [0], [0], [1], [0, 0, 1, 1], [], []>} : vector<16x64xbf16>, vector<64x192xbf16>, vector<16x192xf32> -> vector<16x192xf32>
    %c0_8 = arith.constant 0 : index
    %c0_9 = arith.constant 0 : index
    %22 = vector.load %arg5[%c0_8, %c0_9] : memref<1x192xf32, #tpu.memory_space<vmem>>, vector<1x192xf32>
    %23 = vector.broadcast %22 : vector<1x192xf32> to vector<16x192xf32>
    %24 = arith.addf %21, %23 : vector<16x192xf32>
    %25 = vector.extract_strided_slice %24 {offsets = [0, 0], sizes = [16, 64], strides = [1, 1]} : vector<16x192xf32> to vector<16x64xf32>
    %26 = vector.shape_cast %25 : vector<16x64xf32> to vector<16x2x32xf32>
    %27 = vector.extract_strided_slice %24 {offsets = [0, 64], sizes = [16, 64], strides = [1, 1]} : vector<16x192xf32> to vector<16x64xf32>
    %28 = vector.shape_cast %27 : vector<16x64xf32> to vector<16x2x32xf32>
    %29 = vector.extract_strided_slice %24 {offsets = [0, 128], sizes = [16, 64], strides = [1, 1]} : vector<16x192xf32> to vector<16x64xf32>
    %30 = vector.shape_cast %29 : vector<16x64xf32> to vector<16x2x32xf32>
    %c0_10 = arith.constant 0 : index
    %c0_11 = arith.constant 0 : index
    %c0_12 = arith.constant 0 : index
    %31 = vector.load %arg2[%c0_10, %c0_11, %c0_12] : memref<16x1x32xf32, #tpu.memory_space<vmem>>, vector<16x1x32xf32>
    %c0_13 = arith.constant 0 : index
    %c0_14 = arith.constant 0 : index
    %c0_15 = arith.constant 0 : index
    %32 = vector.load %arg3[%c0_13, %c0_14, %c0_15] : memref<16x1x32xf32, #tpu.memory_space<vmem>>, vector<16x1x32xf32>
    %33 = vector.extract_strided_slice %26 {offsets = [0, 0, 16], sizes = [16, 2, 16], strides = [1, 1, 1]} : vector<16x2x32xf32> to vector<16x2x16xf32>
    %34 = vector.extract_strided_slice %26 {offsets = [0, 0, 0], sizes = [16, 2, 16], strides = [1, 1, 1]} : vector<16x2x32xf32> to vector<16x2x16xf32>
    %35 = tpu.concatenate %33, %34 in 2 : vector<16x2x16xf32>, vector<16x2x16xf32> -> vector<16x2x32xf32>
    %36 = vector.broadcast %31 : vector<16x1x32xf32> to vector<16x2x32xf32>
    %37 = arith.mulf %26, %36 : vector<16x2x32xf32>
    %38 = vector.broadcast %32 : vector<16x1x32xf32> to vector<16x2x32xf32>
    %39 = arith.mulf %35, %38 : vector<16x2x32xf32>
    %40 = arith.addf %37, %39 : vector<16x2x32xf32>
    %41 = vector.extract_strided_slice %28 {offsets = [0, 0, 16], sizes = [16, 2, 16], strides = [1, 1, 1]} : vector<16x2x32xf32> to vector<16x2x16xf32>
    %42 = vector.extract_strided_slice %28 {offsets = [0, 0, 0], sizes = [16, 2, 16], strides = [1, 1, 1]} : vector<16x2x32xf32> to vector<16x2x16xf32>
    %43 = tpu.concatenate %41, %42 in 2 : vector<16x2x16xf32>, vector<16x2x16xf32> -> vector<16x2x32xf32>
    %44 = vector.broadcast %31 : vector<16x1x32xf32> to vector<16x2x32xf32>
    %45 = arith.mulf %28, %44 : vector<16x2x32xf32>
    %46 = vector.broadcast %32 : vector<16x1x32xf32> to vector<16x2x32xf32>
    %47 = arith.mulf %43, %46 : vector<16x2x32xf32>
    %48 = arith.addf %45, %47 : vector<16x2x32xf32>
    %49 = tpu.transpose %40, [1, 0, 2] : vector<16x2x32xf32> -> vector<2x16x32xf32>
    %50 = arith.truncf %49 : vector<2x16x32xf32> to vector<2x16x32xbf16>
    %51 = tpu.transpose %48, [1, 0, 2] : vector<16x2x32xf32> -> vector<2x16x32xf32>
    %52 = arith.truncf %51 : vector<2x16x32xf32> to vector<2x16x32xbf16>
    %53 = tpu.transpose %30, [1, 0, 2] : vector<16x2x32xf32> -> vector<2x16x32xf32>
    %54 = arith.truncf %53 : vector<2x16x32xf32> to vector<2x16x32xbf16>
    "tpu.trace_start"() <{level = 10 : i32, message = "hqd,hkd->hqk"}> : () -> ()
    %cst_16 = arith.constant dense<0.000000e+00> : vector<2x16x16xf32>
    %55 = tpu.matmul %50, %52, %cst_16 {dimension_numbers = #tpu.dot_dimension_numbers<[2], [2], [1], [1], [0, 0, 0, 1, 1, 1], [0], [0]>} : vector<2x16x32xbf16>, vector<2x16x32xbf16>, vector<2x16x16xf32> -> vector<2x16x16xf32>
    "tpu.trace_stop"() : () -> ()
    %cst_17 = arith.constant 0.176776692 : f32
    %56 = vector.broadcast %cst_17 : f32 to vector<2x16x16xf32>
    %57 = arith.mulf %55, %56 : vector<2x16x16xf32>
    %c0_18 = arith.constant 0 : index
    %c0_19 = arith.constant 0 : index
    %58 = vector.load %arg1[%c0_18, %c0_19] : memref<1x16xi32, #tpu.memory_space<vmem>>, vector<1x16xi32>
    %59 = vector.shape_cast %58 : vector<1x16xi32> to vector<1x16x1xi32>
    %60 = vector.shape_cast %58 : vector<1x16xi32> to vector<1x1x16xi32>
    %61 = vector.broadcast %59 : vector<1x16x1xi32> to vector<1x16x16xi32>
    %62 = vector.broadcast %60 : vector<1x1x16xi32> to vector<1x16x16xi32>
    %63 = arith.cmpi eq, %61, %62 : vector<1x16x16xi32>
    %cst_20 = arith.constant -1.000000e+09 : f32
    %64 = vector.shape_cast %63 : vector<1x16x16xi1> to vector<1x16x16xi1>
    %65 = vector.broadcast %64 : vector<1x16x16xi1> to vector<2x16x16xi1>
    %66 = vector.broadcast %cst_20 : f32 to vector<2x16x16xf32>
    %67 = arith.select %65, %57, %66 : vector<2x16x16xi1>, vector<2x16x16xf32>
    %cst_21 = arith.constant dense<0xFF800000> : vector<2x16xf32>
    %68 = vector.multi_reduction <maximumf>, %67, %cst_21 [2] : vector<2x16x16xf32> to vector<2x16xf32>
    %69 = vector.shape_cast %68 : vector<2x16xf32> to vector<2x16x1xf32>
    %70 = vector.broadcast %69 : vector<2x16x1xf32> to vector<2x16x16xf32>
    %71 = arith.subf %67, %70 : vector<2x16x16xf32>
    %72 = math.exp %71 : vector<2x16x16xf32>
    %cst_22 = arith.constant dense<0.000000e+00> : vector<2x16xf32>
    %73 = vector.multi_reduction <add>, %72, %cst_22 [2] : vector<2x16x16xf32> to vector<2x16xf32>
    %74 = vector.shape_cast %73 : vector<2x16xf32> to vector<2x16x1xf32>
    %75 = tpu.reciprocal %74 {approx = true} : vector<2x16x1xf32> -> vector<2x16x1xf32>
    %76 = vector.broadcast %75 : vector<2x16x1xf32> to vector<2x16x16xf32>
    %77 = arith.mulf %72, %76 : vector<2x16x16xf32>
    %78 = arith.truncf %77 : vector<2x16x16xf32> to vector<2x16x16xbf16>
    "tpu.trace_start"() <{level = 10 : i32, message = "hqk,hkd->hqd"}> : () -> ()
    %cst_23 = arith.constant dense<0.000000e+00> : vector<2x16x32xf32>
    %79 = tpu.matmul %78, %54, %cst_23 {dimension_numbers = #tpu.dot_dimension_numbers<[2], [1], [1], [2], [0, 0, 0, 1, 1, 2], [0], [0]>} : vector<2x16x16xbf16>, vector<2x16x32xbf16>, vector<2x16x32xf32> -> vector<2x16x32xf32>
    "tpu.trace_stop"() : () -> ()
    %80 = tpu.transpose %79, [1, 0, 2] : vector<2x16x32xf32> -> vector<16x2x32xf32>
    %81 = vector.shape_cast %80 : vector<16x2x32xf32> to vector<16x64xf32>
    %82 = arith.truncf %81 : vector<16x64xf32> to vector<16x64xbf16>
    %c0_24 = arith.constant 0 : index
    %c0_25 = arith.constant 0 : index
    %83 = vector.load %arg6[%c0_24, %c0_25] : memref<64x64xbf16, #tpu.memory_space<vmem>>, vector<64x64xbf16>
    %cst_26 = arith.constant dense<0.000000e+00> : vector<16x64xf32>
    %84 = tpu.matmul %82, %83, %cst_26 {dimension_numbers = #tpu.dot_dimension_numbers<[1], [0], [0], [1], [0, 0, 1, 1], [], []>} : vector<16x64xbf16>, vector<64x64xbf16>, vector<16x64xf32> -> vector<16x64xf32>
    %c0_27 = arith.constant 0 : index
    %c0_28 = arith.constant 0 : index
    %85 = vector.load %arg7[%c0_27, %c0_28] : memref<1x64xf32, #tpu.memory_space<vmem>>, vector<1x64xf32>
    %86 = vector.broadcast %85 : vector<1x64xf32> to vector<16x64xf32>
    %87 = arith.addf %84, %86 : vector<16x64xf32>
    %88 = arith.addf %0, %87 : vector<16x64xf32>
    %cst_29 = arith.constant dense<0.000000e+00> : vector<16xf32>
    %89 = vector.multi_reduction <add>, %88, %cst_29 [1] : vector<16x64xf32> to vector<16xf32>
    %90 = vector.shape_cast %89 : vector<16xf32> to vector<16x1xf32>
    %cst_30 = arith.constant 6.400000e+01 : f32
    %91 = vector.broadcast %cst_30 : f32 to vector<16x1xf32>
    %92 = arith.divf %90, %91 : vector<16x1xf32>
    %93 = vector.broadcast %92 : vector<16x1xf32> to vector<16x64xf32>
    %94 = arith.subf %88, %93 : vector<16x64xf32>
    %95 = arith.mulf %94, %94 : vector<16x64xf32>
    %cst_31 = arith.constant dense<0.000000e+00> : vector<16xf32>
    %96 = vector.multi_reduction <add>, %95, %cst_31 [1] : vector<16x64xf32> to vector<16xf32>
    %97 = vector.shape_cast %96 : vector<16xf32> to vector<16x1xf32>
    %cst_32 = arith.constant 6.400000e+01 : f32
    %98 = vector.broadcast %cst_32 : f32 to vector<16x1xf32>
    %99 = arith.divf %97, %98 : vector<16x1xf32>
    %100 = vector.broadcast %92 : vector<16x1xf32> to vector<16x64xf32>
    %101 = arith.subf %88, %100 : vector<16x64xf32>
    %cst_33 = arith.constant 9.99999997E-7 : f32
    %102 = vector.broadcast %cst_33 : f32 to vector<16x1xf32>
    %103 = arith.addf %99, %102 : vector<16x1xf32>
    %104 = math.rsqrt %103 : vector<16x1xf32>
    %105 = vector.broadcast %104 : vector<16x1xf32> to vector<16x64xf32>
    %106 = arith.mulf %101, %105 : vector<16x64xf32>
    %107 = arith.truncf %106 : vector<16x64xf32> to vector<16x64xbf16>
    %c0_34 = arith.constant 0 : index
    %c0_35 = arith.constant 0 : index
    %108 = vector.load %arg8[%c0_34, %c0_35] : memref<64x256xbf16, #tpu.memory_space<vmem>>, vector<64x256xbf16>
    %cst_36 = arith.constant dense<0.000000e+00> : vector<16x256xf32>
    %109 = tpu.matmul %107, %108, %cst_36 {dimension_numbers = #tpu.dot_dimension_numbers<[1], [0], [0], [1], [0, 0, 1, 1], [], []>} : vector<16x64xbf16>, vector<64x256xbf16>, vector<16x256xf32> -> vector<16x256xf32>
    %c0_37 = arith.constant 0 : index
    %c0_38 = arith.constant 0 : index
    %110 = vector.load %arg9[%c0_37, %c0_38] : memref<1x256xf32, #tpu.memory_space<vmem>>, vector<1x256xf32>
    %111 = vector.broadcast %110 : vector<1x256xf32> to vector<16x256xf32>
    %112 = arith.addf %109, %111 : vector<16x256xf32>
    %113 = vector.extract_strided_slice %112 {offsets = [0, 0], sizes = [16, 128], strides = [1, 1]} : vector<16x256xf32> to vector<16x128xf32>
    %114 = vector.extract_strided_slice %112 {offsets = [0, 128], sizes = [16, 128], strides = [1, 1]} : vector<16x256xf32> to vector<16x128xf32>
    %115 = arith.negf %113 : vector<16x128xf32>
    %116 = math.exp %115 : vector<16x128xf32>
    %cst_39 = arith.constant 1.000000e+00 : f32
    %117 = vector.broadcast %cst_39 : f32 to vector<16x128xf32>
    %118 = arith.addf %117, %116 : vector<16x128xf32>
    %119 = arith.divf %117, %118 : vector<16x128xf32>
    %120 = arith.mulf %113, %119 : vector<16x128xf32>
    %121 = arith.mulf %120, %114 : vector<16x128xf32>
    %122 = arith.truncf %121 : vector<16x128xf32> to vector<16x128xbf16>
    %c0_40 = arith.constant 0 : index
    %c0_41 = arith.constant 0 : index
    %123 = vector.load %arg10[%c0_40, %c0_41] : memref<128x64xbf16, #tpu.memory_space<vmem>>, vector<128x64xbf16>
    %cst_42 = arith.constant dense<0.000000e+00> : vector<16x64xf32>
    %124 = tpu.matmul %122, %123, %cst_42 {dimension_numbers = #tpu.dot_dimension_numbers<[1], [0], [0], [1], [0, 0, 1, 1], [], []>} : vector<16x128xbf16>, vector<128x64xbf16>, vector<16x64xf32> -> vector<16x64xf32>
    %c0_43 = arith.constant 0 : index
    %c0_44 = arith.constant 0 : index
    %125 = vector.load %arg11[%c0_43, %c0_44] : memref<1x64xf32, #tpu.memory_space<vmem>>, vector<1x64xf32>
    %126 = vector.broadcast %125 : vector<1x64xf32> to vector<16x64xf32>
    %127 = arith.addf %124, %126 : vector<16x64xf32>
    %128 = arith.addf %88, %127 : vector<16x64xf32>
    %c0_45 = arith.constant 0 : index
    %c0_46 = arith.constant 0 : index
    %129 = vector.load %arg12[%c0_45, %c0_46] : memref<16x64xf32, #tpu.memory_space<vmem>>, vector<16x64xf32>
    tpu.vector_store %arg12[%c0_45, %c0_46], %128 {strides = array<i32>} : memref<16x64xf32, #tpu.memory_space<vmem>>, vector<16x64xf32>,
    return
  }
}

</mosaic_0001>

<bundles_post_ra>
// kernel: tpu_custom_call.1
= control target key start
LH: loop header
LB: loop body
LE: loop exit
PB: predicated region body
PF: predicated region fallthrough
CT: control target
= control target key end

     0   :  { %17 = vsyncpa [#allocation3], 0  ;;  %s3471_s0 = inlined_call_operand.hbm [shape: f32[16,64], index: 0, kind: input, shape index: {}]   ;;  %s3472_s1 = inlined_call_operand.vmem [shape: s32[1,16], index: 1, kind: input, shape index: {}]   ;;  %s3473_s2 = inlined_call_operand.hbm [shape: f32[16,1,32], index: 2, kind: input, shape index: {}]   ;;  %s3474_s3 = inlined_call_operand.hbm [shape: f32[16,1,32], index: 3, kind: input, shape index: {}]   ;;  %s3475_s4 = inlined_call_operand.vmem [shape: bf16[64,192], index: 4, kind: input, shape index: {}]   ;;  %s3476_s5 = inlined_call_operand.vmem [shape: f32[1,192], index: 5, kind: input, shape index: {}]   ;;  %s3477_s6 = inlined_call_operand.vmem [shape: bf16[64,64], index: 6, kind: input, shape index: {}]   ;;  %s3478_s7 = inlined_call_operand.hbm [shape: f32[1,64], index: 7, kind: input, shape index: {}]   ;;  %s3479_s8 = inlined_call_operand.hbm [shape: bf16[64,256], index: 8, kind: input, shape index: {}]   ;;  %s3480_s9 = inlined_call_operand.vmem [shape: f32[1,256], index: 9, kind: input, shape index: {}]   ;;  %s3481_s10 = inlined_call_operand.vmem [shape: bf16[128,64], index: 10, kind: input, shape index: {}]   ;;  %s3482_s11 = inlined_call_operand.vmem [shape: f32[1,64], index: 11, kind: input, shape index: {}]   ;;  %s3483_s12 = inlined_call_operand.hbm [shape: f32[16,64], index: 12, kind: output, shape index: {}]  }
   0x1   :  { %18 = vsyncpa [#allocation6], 0 }
   0x2   :  { %19 = vsyncpa [#allocation9], 0  ;;  %s40_s23 = sshll.u32 %s3473_s2, 4  ;;  %s41_s23 = int_to_ptr.hbm [resolvable:$true] %s40_s23 }
   0x3   :  { %20 = vsyncpa [#allocation4], 0  ;;  %s2453_s24 = smov [#allocation5]   ;;  %s73_s28 = sshll.u32 %s3478_s7, 4  ;;  %s74_s28 = int_to_ptr.hbm [resolvable:$true] %s73_s28 }
   0x4   :  { %s42_s25 = sshll.u32 %s2453_s24, 4  ;;  %s2454_s29 = smov 16   ;;  %s43_s25 = int_to_ptr.vmem [resolvable:$true] %s42_s25 }
   0x5   :  { %s2455_s30 = smov 1   ;;  %s2456_s13 = smov [#allocation8]  }
   0x6   :  { %48 = dma.hbm_to_vmem [thread:$0]  %s41_s23, 256, %s43_s25, [#allocation6], %s2454_s29, %s2454_s29, %s2455_s30  }
   0x7   :  { %s75_s14 = sshll.u32 %s2456_s13, 4  ;;  %s25_s2 = sshll.u32 %s3471_s0, 4  ;;  %s76_s14 = int_to_ptr.vmem [resolvable:$true] %s75_s14  ;;  %s26_s2 = int_to_ptr.hbm [resolvable:$true] %s25_s2 }
   0x8   :  { %78 = dma.hbm_to_vmem [thread:$0]  %s74_s28, 16, %s76_s14, [#allocation9]  }
   0x9   :  { %s2457_s17 = smov [#allocation2]   ;;  %s53_s20 = sshll.u32 %s3474_s3, 4  ;;  %s54_s20 = int_to_ptr.hbm [resolvable:$true] %s53_s20 }
   0xa   :  { %s27_s18 = sshll.u32 %s2457_s17, 4  ;;  %s2458_s21 = smov 128   ;;  %s28_s18 = int_to_ptr.vmem [resolvable:$true] %s27_s18 }
   0xb   :  { %s2459_s22 = smov 8   ;;  %s2460_s23 = smov [#allocation7]  }
   0xc   :  { %33 = dma.hbm_to_vmem [thread:$0]  %s26_s2, 256, %s28_s18, [#allocation3], %s2458_s21, %s2458_s21, %s2459_s22  }
   0xd   :  { %s55_s24 = sshll.u32 %s2460_s23, 4  ;;  %s83_s26 = sshll.u32 %s3479_s8, 4  ;;  %s56_s24 = int_to_ptr.vmem [resolvable:$true] %s55_s24  ;;  %s84_s26 = int_to_ptr.hbm [resolvable:$true] %s83_s26 }
   0xe   :  { %61 = dma.hbm_to_vmem [thread:$0]  %s54_s20, 256, %s56_s24, [#allocation6], %s2454_s29, %s2454_s29, %s2455_s30  }
   0xf   :  { %s2461_s27 = smov [#allocation10]  }
  0x10   :  { %s85_s3 = sshll.u32 %s2461_s27, 4  ;;  %s86_s3 = int_to_ptr.vmem [resolvable:$true] %s85_s3 }
  0x11   :  { %91 = dma.hbm_to_vmem [thread:$0]  %s84_s26, 1024, %s86_s3, [#allocation9], %s2458_s21, %s2458_s21, %s2459_s22  }
  0x12   :  { %2445 = dma.done.wait [#allocation3], 256  }
  0x13   :  { %2446 = vsyncadd [#allocation3], 4294967040 }
  0x14   :  { %2447 = dma.done.wait [#allocation6], 512  }
  0x15   :  { %2448 = vsyncadd [#allocation6], 4294966784 }
  0x16   :  { %2449 = dma.done.wait [#allocation9], 1040  }
  0x17   :  { %2450 = vsyncadd [#allocation9], 4294966256  ;;  %vm121_vm0 = vcmask 523264   ;;  %v119_v0 = vld [vmem:[#allocation2] sm:$0xff]  ;;  %v120_v1 = vld [vmem:[#allocation2 + $0x8] sm:$0xff]  ;;  %v2462_v4 = vmov 64.0  }
  0x18   :  { %v122_v2 = vsel %vm121_vm0, %v119_v0, 0.0  ;;  %v125_v3 = vsel %vm121_vm0, %v120_v1, 0.0  ;;  %2264 = vrcp.f32 %v2462_v4  ;;  %v2074_v21 = vld [vmem:[%s3475_s4 + $0x30] sm:$0xf]  ;;  %v2178_v22 = vld [vmem:[%s3475_s4 + $0x34] sm:$0xf0] }
  0x19   :  { %123 = vadd.xlane.f32.xlu0 %v122_v2  ;;  %v2177_v23 = vld [vmem:[%s3475_s4 + $0x34] sm:$0xf]  ;;  %v2075_v24 = vor.u32 %v2178_v22, %v2074_v21  ;;  %v2076_v25 = vld [vmem:[%s3475_s4 + $0x38] sm:$0xf0]  ;;  %v2066_v27 = vld [vmem:[%s3475_s4 + $0x20] sm:$0xf] }
  0x1a   :  { %v2079_v26 = vor.u32 %v2177_v23, %v2076_v25  ;;  %v2176_v28 = vld [vmem:[%s3475_s4 + $0x24] sm:$0xf0]  ;;  %v2175_v29 = vld [vmem:[%s3475_s4 + $0x24] sm:$0xf]  ;;  %v2068_v31 = vld [vmem:[%s3475_s4 + $0x28] sm:$0xf0] }
  0x1b   :  { %235 = vmatpush.bf16.msra.mxu0 %v2075_v24  ;;  %v2067_v30 = vor.u32 %v2176_v28, %v2066_v27  ;;  %v2071_v32 = vor.u32 %v2175_v29, %v2068_v31  ;;  %v2058_v33 = vld [vmem:[%s3475_s4 + $0x10] sm:$0xf]  ;;  %v2174_v34 = vld [vmem:[%s3475_s4 + $0x14] sm:$0xf0]  ;;  %v2173_v35 = vld [vmem:[%s3475_s4 + $0x14] sm:$0xf] }
  0x1c   :  { %249 = vmatpush.bf16.msra.mxu1 %v2079_v26  ;;  %v2059_v36 = vor.u32 %v2174_v34, %v2058_v33  ;;  %v2060_v37 = vld [vmem:[%s3475_s4 + $0x18] sm:$0xf0]  ;;  %v2050_v39 = vld [vmem:[%s3475_s4] sm:$0xf]  ;;  %v2172_v40 = vld [vmem:[%s3475_s4 + $0x4] sm:$0xf0] }
  0x1d   :  { %v2063_v38 = vor.u32 %v2173_v35, %v2060_v37  ;;  %v2171_v41 = vld [vmem:[%s3475_s4 + $0x4] sm:$0xf]  ;;  %v2051_v42 = vor.u32 %v2172_v40, %v2050_v39  ;;  %v2052_v43 = vld [vmem:[%s3475_s4 + $0x8] sm:$0xf0]  ;;  %v182_v4 = vld [vmem:[%s3476_s5] sm:$0x3] }
  0x1e   :  { %v2265_v5 = vpop.eup %2264  ;;  %v2055_v44 = vor.u32 %v2171_v41, %v2052_v43  ;;  %s2463_s23 = smov 64   ;;  %s2464_s24 = smov 96   ;;  %vm268_vm8 = vcmask 1047556   ;;  %vm744_vm9 = vcmask 130048   ;;  %vm1339_vm10 = vcmask 261120  }
  0x1f   :  { %v129_v6 = vmul.f32 64.0, %v2265_v5  ;;  %vm133_vm1 = vweird.f32 %v2265_v5  ;;  %236 = vmatpush.bf16.msra.mxu0 %v2067_v30  ;;  %s2467_s0 = smov 112   ;;  %s2468_s13 = smov 32  }
  0x20   :  { %250 = vmatpush.bf16.msra.mxu1 %v2071_v32  ;;  %s2469_s3 = smov [#allocation11]  }
  0x21   :  { %126 = vadd.xlane.f32.xlu0 %v125_v3  ;;  %v130_v7 = vsub.f32 1.0, %v129_v6  ;;  %s2031_s8 = sshll.u32 %s2469_s3, 4  ;;  %s2032_s8 = int_to_ptr.vmem [resolvable:$true] %s2031_s8 }
  0x23   :  { %v131_v8 = vmul.f32 %v2265_v5, %v130_v7  ;;  %237 = vmatpush.bf16.msra.mxu0 %v2059_v36 }
  0x24   :  { %251 = vmatpush.bf16.msra.mxu1 %v2063_v38 }
  0x25   :  { %v132_v9 = vadd.f32 %v2265_v5, %v131_v8 }
  0x27   :  { %v2562_v10 = vsel %vm133_vm1, %v2265_v5, %v132_v9  ;;  %238 = vmatpush.bf16.msra.mxu0 %v2051_v42  ;;  %v184_v5 = vperm.slane %v182_v4, 0 }
  0x28   :  { %3487 = vst [vmem:[#allocation16_spill] sm:$0xff] %v2562_v10  ;;  %252 = vmatpush.bf16.msra.mxu1 %v2055_v44 }
  0x8c   :  { %v124_v11 = vpop.xlane.xlu0 %123 }
  0x8d   :  { %v135_v12 = vmul.f32 %v2562_v10, %v124_v11  ;;  %v2465_v11 = vmov 1983009808  }
  0x8f   :  { %v2565_v13 = vsub.f32 %v119_v0, %v135_v12  ;;  %v271_v12 = vunpack.c.l.s4 %v2465_v11 }
  0x91   :  { %v139_v14 = vmul.f32 %v2565_v13, %v2565_v13 }
  0x93   :  { %v141_v15 = vsel %vm121_vm0, %v139_v14, 0.0  ;;  %v2466_v14 = vmov 1934713408  }
  0x94   :  { %142 = vadd.xlane.f32.xlu1 %v141_v15  ;;  %v127_v16 = vpop.xlane.xlu0 %126  ;;  %v293_v15 = vunpack.c.l.s4 %v2466_v14 }
  0x95   :  { %v136_v17 = vmul.f32 %v2562_v10, %v127_v16 }
  0x97   :  { %v2571_v18 = vsub.f32 %v120_v1, %v136_v17 }
  0x99   :  { %v140_v19 = vmul.f32 %v2571_v18, %v2571_v18 }
  0x9b   :  { %v144_v20 = vsel %vm121_vm0, %v140_v19, 0.0 }
  0x9c   :  { %145 = vadd.xlane.f32.xlu1 %v144_v20 }
 0x107   :  { %v143_v45 = vpop.xlane.xlu1 %142 }
 0x108   :  { %v147_v46 = vmul.f32 %v143_v45, %v2562_v10 }
 0x10a   :  { %v149_v47 = vadd.f32 1e-06, %v147_v46 }
 0x10c   :  { %2266 = vrsqrt.f32 %v149_v47  ;;  %vm157_vm3 = vweird.f32 %v149_v47 }
 0x10f   :  { %v146_v48 = vpop.xlane.xlu1 %145 }
 0x110   :  { %v148_v49 = vmul.f32 %v146_v48, %v2562_v10 }
 0x112   :  { %v2267_v50 = vpop.eup %2266  ;;  %v150_v51 = vadd.f32 1e-06, %v148_v49 }
 0x113   :  { %v152_v52 = vmul.f32 %v2267_v50, %v149_v47  ;;  %vm158_vm2 = vweird.f32 %v2267_v50 }
 0x114   :  { %2268 = vrsqrt.f32 %v150_v51  ;;  %vm159_vm5 = vmor %vm157_vm3, %vm158_vm2  ;;  %vm167_vm6 = vweird.f32 %v150_v51 }
 0x115   :  { %v153_v53 = vmul.f32 %v2267_v50, %v152_v52 }
 0x117   :  { %v154_v54 = vmul.f32 0.5, %v153_v53 }
 0x119   :  { %v155_v56 = vsub.f32 1.5, %v154_v54 }
 0x11a   :  { %v2269_v55 = vpop.eup %2268 }
 0x11b   :  { %v162_v57 = vmul.f32 %v2269_v55, %v150_v51  ;;  %v156_v59 = vmul.f32 %v2267_v50, %v155_v56  ;;  %vm168_vm4 = vweird.f32 %v2269_v55 }
 0x11c   :  { %vm169_vm7 = vmor %vm167_vm6, %vm168_vm4 }
 0x11d   :  { %v163_v58 = vmul.f32 %v2269_v55, %v162_v57  ;;  %v160_v63 = vsel %vm159_vm5, %v2267_v50, %v156_v59 }
 0x11e   :  { %v171_v1 = vmul.f32 %v160_v63, %v2565_v13  ;;  %v2641_v13 = vunpack.c.0.s8 %v271_v12 }
 0x11f   :  { %v164_v60 = vmul.f32 0.5, %v163_v58 }
 0x121   :  { %v165_v61 = vsub.f32 1.5, %v164_v60 }
 0x123   :  { %v166_v62 = vmul.f32 %v2269_v55, %v165_v61 }
 0x125   :  { %v170_v0 = vsel %vm169_vm7, %v2269_v55, %v166_v62 }
 0x126   :  { %v172_v2 = vmul.f32 %v170_v0, %v2571_v18  ;;  %v2644_v18 = vunpack.c.0.s8 %v293_v15 }
 0x128   :  { %v173_v3 = vpack.c.bf16 %v172_v2, %v171_v1 }
 0x12a   :  { %2080 = vmatmul.msk.bf16.vlgmr.msra.gmra.mxu0 %vm121_vm0, %v173_v3  ;;  %2081 = vmatmul.msk.bf16.vlgmr.msra.gmra.mxu1 %vm121_vm0, %v173_v3 }
 0x1a7   :  { %v240_v6 = vpop.f32.mrf.mxu0 }
 0x1a8   :  { %v241_v7 = vadd.f32 %v240_v6, %v184_v5 }
 0x1aa   :  { %372 = vrot.lane.b32.xlu0 %v241_v7, %s2463_s23  ;;  %261 = vrot.lane.b32.xlu2 %v241_v7, %s2464_s24  ;;  %v267_v16 = vrot.slane %v241_v7, 4  ;;  %v273_v17 = vperm.slane %v241_v7, %v2641_v13 }
 0x1ac   :  { %v269_v20 = vsel %vm268_vm8, 0.0, %v267_v16  ;;  %v290_v21 = vrot.slane %v273_v17, 4 }
 0x1ad   :  { %v277_v26 = vperm.slane %v269_v20, %v2641_v13 }
 0x1af   :  { %v242_v8 = vpop.f32.mrf.mxu0  ;;  %v302_v32 = vrot.slane %v277_v26, 4 }
 0x1b0   :  { %v2635_v9 = vadd.f32 %v242_v8, %v184_v5 }
 0x1b2   :  { %374 = vrot.lane.b32.xlu1 %v2635_v9, %s2463_s23  ;;  %263 = vrot.lane.b32.xlu2 %v2635_v9, %s2464_s24  ;;  %v325_v44 = vperm.slane %v2635_v9, %v2641_v13  ;;  %v320_v54 = vrot.slane %v2635_v9, 4 }
 0x1b4   :  { %v342_v48 = vrot.slane %v325_v44, 4  ;;  %v321_v57 = vsel %vm268_vm8, 0.0, %v320_v54 }
 0x1b5   :  { %v329_v59 = vperm.slane %v321_v57, %v2641_v13 }
 0x1b7   :  { %v354_v3 = vrot.slane %v329_v59, 4 }
 0x204   :  { %v262_v19 = vpop.permute.xlu2 %261 }
 0x205   :  { %v278_v22 = vrot.slane %v262_v19, 4  ;;  %v283_v23 = vperm.slane %v262_v19, %v2641_v13  ;;  %376 = vrot.lane.b32.xlu2 %v262_v19, %s2463_s23 }
 0x207   :  { %v279_v24 = vsel %vm268_vm8, 0.0, %v278_v22  ;;  %v291_v25 = vsel %vm268_vm8, %v283_v23, %v290_v21  ;;  %v288_v33 = vrot.slane %v283_v23, 4 }
 0x208   :  { %v2653_v27 = vperm.slane %v291_v25, %v2644_v18  ;;  %v287_v28 = vperm.slane %v279_v24, %v2641_v13 }
 0x209   :  { %v289_v35 = vsel %vm268_vm8, %v288_v33, %v273_v17 }
 0x20a   :  { %652 = vrot.lane.b32.xlu0 %v2653_v27, %s2467_s0  ;;  %v314_v29 = vrot.slane %v2653_v27, 4  ;;  %v303_v34 = vsel %vm268_vm8, %v287_v28, %v302_v32  ;;  %v300_v37 = vrot.slane %v287_v28, 4  ;;  %v2673_v38 = vperm.slane %v289_v35, %v2644_v18 }
 0x20b   :  { %v2668_v36 = vperm.slane %v303_v34, %v2644_v18 }
 0x20c   :  { %v264_v30 = vpop.permute.xlu2 %263  ;;  %v2660_v31 = vsel %vm268_vm8, 0.0, %v314_v29  ;;  %v301_v40 = vsel %vm268_vm8, %v300_v37, %v277_v26  ;;  %v312_v41 = vrot.slane %v2673_v38, 4 }
 0x20d   :  { %378 = vrot.lane.b32.xlu2 %v264_v30, %s2463_s23  ;;  %654 = vrot.lane.b32.xlu1 %v2660_v31, %s2467_s0  ;;  %v318_v39 = vrot.slane %v2668_v36, 4  ;;  %v2686_v43 = vperm.slane %v301_v40, %v2644_v18  ;;  %v335_v46 = vperm.slane %v264_v30, %v2641_v13  ;;  %v330_v49 = vrot.slane %v264_v30, 4 }
 0x20e   :  { %v2693_v45 = vsel %vm268_vm8, 0.0, %v312_v41 }
 0x20f   :  { %v2683_v42 = vsel %vm268_vm8, 0.0, %v318_v39  ;;  %v316_v47 = vrot.slane %v2686_v43, 4  ;;  %v343_v50 = vsel %vm268_vm8, %v335_v46, %v342_v48  ;;  %v331_v52 = vsel %vm268_vm8, 0.0, %v330_v49  ;;  %v2819_v48 = vld [vmem:[#allocation7 + $0x6] ss:$0 sm:$0xff] }
 0x210   :  { %v2709_v53 = vperm.slane %v343_v50, %v2644_v18  ;;  %v339_v55 = vperm.slane %v331_v52, %v2641_v13  ;;  %v340_v61 = vrot.slane %v335_v46, 4 }
 0x211   :  { %v2703_v51 = vsel %vm268_vm8, 0.0, %v316_v47  ;;  %v2817_v47 = vld [vmem:[#allocation5 + $0x6] ss:$0 sm:$0xff] }
 0x212   :  { %700 = vrot.lane.b32.xlu0 %v2653_v27, %s2454_s29  ;;  %v366_v56 = vrot.slane %v2709_v53, 4  ;;  %v352_v58 = vrot.slane %v339_v55, 4  ;;  %v341_v63 = vsel %vm268_vm8, %v340_v61, %v325_v44  ;;  %v355_v5 = vsel %vm268_vm8, %v339_v55, %v354_v3 }
 0x213   :  { %v2737_v1 = vperm.slane %v341_v63, %v2644_v18  ;;  %v2752_v7 = vperm.slane %v355_v5, %v2644_v18  ;;  %v815_v54 = vmul.f32 %v2817_v47, %v2668_v36 }
 0x214   :  { %v2723_v60 = vsel %vm268_vm8, 0.0, %v366_v56  ;;  %v353_v62 = vsel %vm268_vm8, %v352_v58, %v329_v59 }
 0x215   :  { %702 = vrot.lane.b32.xlu1 %v2660_v31, %s2454_s29  ;;  %660 = vrot.lane.b32.xlu2 %v2668_v36, %s2467_s0  ;;  %v2732_v0 = vperm.slane %v353_v62, %v2644_v18  ;;  %v364_v4 = vrot.slane %v2737_v1, 4  ;;  %v370_v9 = vrot.slane %v2752_v7, 4 }
 0x217   :  { %v368_v2 = vrot.slane %v2732_v0, 4  ;;  %v2755_v8 = vsel %vm268_vm8, 0.0, %v364_v4  ;;  %v2769_v11 = vsel %vm268_vm8, 0.0, %v370_v9 }
 0x219   :  { %v2747_v6 = vsel %vm268_vm8, 0.0, %v368_v2 }
 0x21a   :  { %710 = vrot.lane.b32.xlu0 %v2683_v42, %s2454_s29 }
 0x21c   :  { %v373_v12 = vpop.permute.xlu0 %372 }
 0x21d   :  { %650 = vrot.lane.b32.xlu1 %v2693_v45, %s2467_s0  ;;  %708 = vrot.lane.b32.xlu2 %v2668_v36, %s2454_s29  ;;  %v384_v14 = vrot.slane %v373_v12, 4  ;;  %v389_v15 = vperm.slane %v373_v12, %v2641_v13  ;;  %v2846_v12 = vld [vmem:[#allocation5 + $0x2] ss:$0 sm:$0xff] }
 0x21f   :  { %v385_v17 = vsel %vm268_vm8, 0.0, %v384_v14  ;;  %v406_v19 = vrot.slane %v389_v15, 4  ;;  %v2848_v14 = vld [vmem:[#allocation7 + $0x2] ss:$0 sm:$0xff] }
 0x220   :  { %v393_v25 = vperm.slane %v385_v17, %v2641_v13 }
 0x222   :  { %658 = vrot.lane.b32.xlu0 %v2703_v51, %s2467_s0  ;;  %v418_v32 = vrot.slane %v393_v25, 4 }
 0x224   :  { %v375_v49 = vpop.permute.xlu1 %374 }
 0x225   :  { %698 = vrot.lane.b32.xlu1 %v2693_v45, %s2454_s29  ;;  %656 = vrot.lane.b32.xlu2 %v2686_v43, %s2467_s0  ;;  %v436_v62 = vrot.slane %v375_v49, 4 }
 0x227   :  { %v437_v5 = vsel %vm268_vm8, 0.0, %v436_v62 }
 0x228   :  { %v2854_v17 = vperm.slane %v437_v5, %v2641_v13  ;;  %v2901_v5 = vld [vmem:[#allocation7 + $0x7] ss:$0 sm:$0xff] }
 0x22a   :  { %706 = vrot.lane.b32.xlu0 %v2703_v51, %s2454_s29 }
 0x22d   :  { %670 = vrot.lane.b32.xlu1 %v2723_v60, %s2467_s0  ;;  %704 = vrot.lane.b32.xlu2 %v2686_v43, %s2454_s29 }
 0x232   :  { %668 = vrot.lane.b32.xlu0 %v2709_v53, %s2467_s0 }
 0x235   :  { %718 = vrot.lane.b32.xlu1 %v2723_v60, %s2454_s29  ;;  %662 = vrot.lane.b32.xlu2 %v2683_v42, %s2467_s0 }
 0x23a   :  { %674 = vrot.lane.b32.xlu0 %v2747_v6, %s2467_s0 }
 0x23d   :  { %666 = vrot.lane.b32.xlu1 %v2755_v8, %s2467_s0  ;;  %676 = vrot.lane.b32.xlu2 %v2752_v7, %s2467_s0 }
 0x242   :  { %722 = vrot.lane.b32.xlu0 %v2747_v6, %s2454_s29 }
 0x245   :  { %714 = vrot.lane.b32.xlu1 %v2755_v8, %s2454_s29  ;;  %724 = vrot.lane.b32.xlu2 %v2752_v7, %s2454_s29 }
 0x24d   :  { %678 = vrot.lane.b32.xlu1 %v2769_v11, %s2467_s0  ;;  %672 = vrot.lane.b32.xlu2 %v2732_v0, %s2467_s0 }
 0x255   :  { %726 = vrot.lane.b32.xlu2 %v2769_v11, %s2454_s29 }
 0x25f   :  { %v377_v16 = vpop.permute.xlu2 %376 }
 0x260   :  { %v394_v20 = vrot.slane %v377_v16, 4  ;;  %v399_v21 = vperm.slane %v377_v16, %v2641_v13 }
 0x262   :  { %v395_v22 = vsel %vm268_vm8, 0.0, %v394_v20  ;;  %v404_v23 = vrot.slane %v399_v21, 4  ;;  %v407_v24 = vsel %vm268_vm8, %v399_v21, %v406_v19  ;;  %v441_v21 = vperm.slane %v375_v49, %v2641_v13 }
 0x263   :  { %v2784_v26 = vperm.slane %v407_v24, %v2644_v18  ;;  %v403_v29 = vperm.slane %v395_v22, %v2641_v13  ;;  %v2865_v24 = vld [vmem:[#allocation5 + $0x4] ss:$0 sm:$0xff] }
 0x264   :  { %v405_v28 = vsel %vm268_vm8, %v404_v23, %v389_v15  ;;  %v2850_v15 = vld [vmem:[#allocation5 + $0x3] ss:$0 sm:$0xff]  ;;  %v2863_v23 = vld [vmem:[#allocation7 + $0x3] ss:$0 sm:$0xff] }
 0x265   :  { %925 = vrot.lane.b32.xlu2 %v2784_v26, %s2467_s0  ;;  %v2791_v30 = vperm.slane %v405_v28, %v2644_v18  ;;  %v419_v34 = vsel %vm268_vm8, %v403_v29, %v418_v32  ;;  %v430_v35 = vrot.slane %v2784_v26, 4  ;;  %v416_v46 = vrot.slane %v403_v29, 4 }
 0x266   :  { %v2800_v37 = vperm.slane %v419_v34, %v2644_v18  ;;  %v811_v32 = vmul.f32 %v2846_v12, %v2653_v27  ;;  %v812_v34 = vmul.f32 %v2850_v15, %v2660_v31  ;;  %v813_v31 = vmul.f32 %v2865_v24, %v2686_v43 }
 0x267   :  { %v379_v33 = vpop.permute.xlu2 %378  ;;  %969 = vrot.lane.b32.xlu1 %v2791_v30, %s2454_s29  ;;  %921 = vrot.lane.b32.xlu0 %v2791_v30, %s2467_s0  ;;  %v2805_v39 = vsel %vm268_vm8, 0.0, %v430_v35  ;;  %v417_v56 = vsel %vm268_vm8, %v416_v46, %v393_v25  ;;  %v428_v57 = vrot.slane %v2791_v30, 4  ;;  %v2867_v25 = vld [vmem:[#allocation7 + $0x4] ss:$0 sm:$0xff] }
 0x268   :  { %v434_v41 = vrot.slane %v2800_v37, 4  ;;  %v2832_v61 = vperm.slane %v417_v56, %v2644_v18  ;;  %v446_v2 = vrot.slane %v379_v33, 4  ;;  %v451_v9 = vperm.slane %v379_v33, %v2641_v13 }
 0x269   :  { %v2837_v63 = vsel %vm268_vm8, 0.0, %v428_v57 }
 0x26a   :  { %v2813_v44 = vsel %vm268_vm8, 0.0, %v434_v41  ;;  %v432_v4 = vrot.slane %v2832_v61, 4  ;;  %v447_v16 = vsel %vm268_vm8, 0.0, %v446_v2  ;;  %v456_v29 = vrot.slane %v451_v9, 4 }
 0x26b   :  { %v455_v28 = vperm.slane %v447_v16, %v2641_v13  ;;  %v470_v41 = vrot.slane %v2854_v17, 4 }
 0x26c   :  { %v2857_v20 = vsel %vm268_vm8, 0.0, %v432_v4  ;;  %v2891_v4 = vld [vmem:[#allocation5 + $0x7] ss:$0 sm:$0xff] }
 0x26d   :  { %973 = vrot.lane.b32.xlu2 %v2784_v26, %s2454_s29  ;;  %v471_v56 = vsel %vm268_vm8, %v455_v28, %v470_v41  ;;  %v468_v41 = vrot.slane %v455_v28, 4  ;;  %v2937_v28 = vld [vmem:[#allocation7 + $0x5] ss:$0 sm:$0xff] }
 0x26e   :  { %v2899_v43 = vperm.slane %v471_v56, %v2644_v18 }
 0x26f   :  { %933 = vrot.lane.b32.xlu1 %v2800_v37, %s2467_s0  ;;  %v661_v40 = vpop.permute.xlu2 %660  ;;  %927 = vrot.lane.b32.xlu0 %v2805_v39, %s2467_s0 }
 0x275   :  { %935 = vrot.lane.b32.xlu2 %v2813_v44, %s2467_s0 }
 0x277   :  { %981 = vrot.lane.b32.xlu1 %v2800_v37, %s2454_s29  ;;  %v709_v50 = vpop.permute.xlu2 %708  ;;  %975 = vrot.lane.b32.xlu0 %v2805_v39, %s2454_s29 }
 0x278   :  { %v751_v52 = vsel %vm744_vm9, %v661_v40, %v709_v50  ;;  %v458_v50 = vrot.slane %v441_v21, 4 }
 0x279   :  { %v879_v55 = vmul.f32 %v2819_v48, %v751_v52 }
 0x27a   :  { %v459_v57 = vsel %vm268_vm8, %v451_v9, %v458_v50 }
 0x27b   :  { %v895_v58 = vadd.f32 %v879_v55, %v815_v54  ;;  %v457_v55 = vsel %vm268_vm8, %v456_v29, %v441_v21 }
 0x27c   :  { %v653_v59 = vpop.permute.xlu0 %652  ;;  %v2904_v16 = vperm.slane %v457_v55, %v2644_v18  ;;  %v469_v55 = vsel %vm268_vm8, %v468_v41, %v2854_v17 }
 0x27d   :  { %983 = vrot.lane.b32.xlu2 %v2813_v44, %s2454_s29 }
 0x27f   :  { %v655_v36 = vpop.permute.xlu1 %654  ;;  %929 = vrot.lane.b32.xlu1 %v2832_v61, %s2467_s0  ;;  %v657_v3 = vpop.permute.xlu2 %656  ;;  %923 = vrot.lane.b32.xlu0 %v2837_v63, %s2467_s0 }
 0x284   :  { %v701_v19 = vpop.permute.xlu0 %700 }
 0x285   :  { %v747_v22 = vsel %vm744_vm9, %v653_v59, %v701_v19  ;;  %931 = vrot.lane.b32.xlu2 %v2857_v20, %s2467_s0  ;;  %v1093_v59 = vrot.slane %v895_v58, 4  ;;  %v2907_v58 = vperm.slane %v459_v57, %v2644_v18 }
 0x286   :  { %v875_v33 = vmul.f32 %v2848_v14, %v747_v22  ;;  %v816_v22 = vmul.f32 %v2891_v4, %v2683_v42 }
 0x287   :  { %v703_v35 = vpop.permute.xlu1 %702  ;;  %977 = vrot.lane.b32.xlu1 %v2832_v61, %s2454_s29  ;;  %v705_v40 = vpop.permute.xlu2 %704  ;;  %971 = vrot.lane.b32.xlu0 %v2837_v63, %s2454_s29 }
 0x288   :  { %v2880_v46 = vadd.f32 %v875_v33, %v811_v32  ;;  %v748_v49 = vsel %vm744_vm9, %v655_v36, %v703_v35  ;;  %v749_v27 = vsel %vm744_vm9, %v657_v3, %v705_v40  ;;  %v482_v32 = vrot.slane %v2907_v58, 4  ;;  %v2918_v35 = vld [vmem:[#allocation5 + $0x1] ss:$0 sm:$0xff]  ;;  %v2922_v40 = vld [vmem:[#allocation7 + $0x1] ss:$0 sm:$0xff] }
 0x289   :  { %v876_v52 = vmul.f32 %v2863_v23, %v748_v49  ;;  %v877_v54 = vmul.f32 %v2867_v25, %v749_v27 }
 0x28a   :  { %v2925_v49 = vsel %vm268_vm8, 0.0, %v482_v32 }
 0x28b   :  { %v892_v62 = vadd.f32 %v876_v52, %v812_v34  ;;  %v893_v2 = vadd.f32 %v877_v54, %v813_v31  ;;  %v810_v52 = vmul.f32 %v2918_v35, %v2693_v45  ;;  %v2935_v54 = vld [vmem:[#allocation5 + $0x5] ss:$0 sm:$0xff]  ;;  %v2948_v45 = vperm.slane %v469_v55, %v2644_v18 }
 0x28c   :  { %v711_v36 = vpop.permute.xlu0 %710  ;;  %v814_v17 = vmul.f32 %v2935_v54, %v2703_v51 }
 0x28d   :  { %v2894_v3 = vsel %vm268_vm8, %v1093_v59, %v893_v2  ;;  %979 = vrot.lane.b32.xlu2 %v2857_v20, %s2454_s29  ;;  %v1087_v56 = vrot.slane %v892_v62, 4 }
 0x28f   :  { %949 = vrot.lane.b32.xlu1 %v2899_v43, %s2467_s0  ;;  %v651_v9 = vpop.permute.xlu1 %650  ;;  %v663_v19 = vpop.permute.xlu2 %662  ;;  %985 = vrot.lane.b32.xlu0 %v2904_v16, %s2454_s29 }
 0x290   :  { %v752_v21 = vsel %vm744_vm9, %v663_v19, %v711_v36  ;;  %v2952_v19 = vld [vmem:[#allocation7 + $0xe] ss:$0 sm:$0xff] }
 0x291   :  { %v880_v29 = vmul.f32 %v2901_v5, %v752_v21 }
 0x293   :  { %v896_v33 = vadd.f32 %v880_v29, %v816_v22 }
 0x294   :  { %v659_v34 = vpop.permute.xlu0 %658 }
 0x295   :  { %941 = vrot.lane.b32.xlu2 %v2907_v58, %s2467_s0  ;;  %v1099_v29 = vrot.slane %v896_v33, 4  ;;  %v1098_v33 = vperm.slane %v2894_v3, %v2641_v13 }
 0x297   :  { %997 = vrot.lane.b32.xlu1 %v2899_v43, %s2454_s29  ;;  %v699_v42 = vpop.permute.xlu1 %698  ;;  %v677_v27 = vpop.permute.xlu2 %676  ;;  %943 = vrot.lane.b32.xlu0 %v2925_v49, %s2467_s0 }
 0x298   :  { %v746_v50 = vsel %vm744_vm9, %v651_v9, %v699_v42  ;;  %v2950_v9 = vld [vmem:[#allocation5 + $0xe] ss:$0 sm:$0xff] }
 0x299   :  { %v874_v31 = vmul.f32 %v2922_v40, %v746_v50  ;;  %v823_v41 = vmul.f32 %v2950_v9, %v2752_v7  ;;  %v480_v50 = vrot.slane %v2904_v16, 4  ;;  %v2978_v7 = vld [vmem:[#allocation7 + $0xb] ss:$0 sm:$0xff] }
 0x29b   :  { %v890_v57 = vadd.f32 %v874_v31, %v810_v52 }
 0x29c   :  { %v707_v59 = vpop.permute.xlu0 %706 }
 0x29d   :  { %v2942_v2 = vsel %vm268_vm8, %v1087_v56, %v890_v57  ;;  %v750_v36 = vsel %vm744_vm9, %v659_v34, %v707_v59  ;;  %989 = vrot.lane.b32.xlu2 %v2907_v58, %s2454_s29  ;;  %v2972_v56 = vld [vmem:[#allocation5 + $0xb] ss:$0 sm:$0xff]  ;;  %v2981_v57 = vsel %vm268_vm8, 0.0, %v480_v50  ;;  %v3012_v50 = vld [vmem:[#allocation7 + $0xd] ss:$0 sm:$0xff] }
 0x29e   :  { %v878_v62 = vmul.f32 %v2937_v28, %v750_v36 }
 0x29f   :  { %945 = vrot.lane.b32.xlu1 %v2948_v45, %s2467_s0  ;;  %v671_v21 = vpop.permute.xlu1 %670  ;;  %v725_v22 = vpop.permute.xlu2 %724  ;;  %991 = vrot.lane.b32.xlu0 %v2925_v49, %s2454_s29 }
 0x2a0   :  { %v894_v32 = vadd.f32 %v878_v62, %v814_v17  ;;  %v759_v34 = vsel %vm744_vm9, %v677_v27, %v725_v22  ;;  %v484_v17 = vrot.slane %v2948_v45, 4  ;;  %v820_v62 = vmul.f32 %v2972_v56, %v2723_v60 }
 0x2a1   :  { %v887_v42 = vmul.f32 %v2952_v19, %v759_v34 }
 0x2a2   :  { %v1100_v51 = vsel %vm268_vm8, %v1099_v29, %v894_v32  ;;  %v486_v29 = vrot.slane %v2899_v43, 4 }
 0x2a3   :  { %v1104_v52 = vperm.slane %v1100_v51, %v2641_v13  ;;  %v2968_v31 = vadd.f32 %v887_v42, %v823_v41  ;;  %v2997_v41 = vsel %vm268_vm8, 0.0, %v484_v17  ;;  %v3010_v51 = vld [vmem:[#allocation5 + $0xd] ss:$0 sm:$0xff] }
 0x2a4   :  { %v2970_v55 = vpop.permute.xlu0 %668  ;;  %3490 = vst [vmem:[#allocation19_spill] sm:$0xff] %v3010_v51 }
 0x2a5   :  { %3488 = vst [vmem:[#allocation17_spill] sm:$0xff] %v2970_v55  ;;  %v1111_v27 = vrot.slane %v1104_v52, 4  ;;  %937 = vrot.lane.b32.xlu2 %v2904_v16, %s2467_s0 }
 0x2a7   :  { %993 = vrot.lane.b32.xlu1 %v2948_v45, %s2454_s29  ;;  %v719_v59 = vpop.permute.xlu1 %718  ;;  %939 = vrot.lane.b32.xlu0 %v2981_v57, %s2467_s0  ;;  %v2988_v36 = vsel %vm268_vm8, %v1111_v27, %v1098_v33  ;;  %v2999_v42 = vpop.permute.xlu2 %672  ;;  %v3014_v33 = vld [vmem:[#allocation5 + $0x9] ss:$0 sm:$0xff] }
 0x2a8   :  { %3489 = vst [vmem:[#allocation18_spill] sm:$0xff] %v2988_v36  ;;  %v756_v3 = vsel %vm744_vm9, %v671_v21, %v719_v59  ;;  %v3004_v21 = vsel %vm268_vm8, 0.0, %v486_v29  ;;  %v3019_v59 = vld [vmem:[#allocation7 + $0x9] ss:$0 sm:$0xff]  ;;  %v3032_v36 = vld [vmem:[#allocation5 + $0xf] ss:$0 sm:$0xff] }
 0x2a9   :  { %v884_v22 = vmul.f32 %v2978_v7, %v756_v3  ;;  %v822_v3 = vmul.f32 %v3010_v51, %v2747_v6  ;;  %v3039_v51 = vld [vmem:[#allocation7 + $0xf] ss:$0 sm:$0xff] }
 0x2ab   :  { %v900_v32 = vadd.f32 %v884_v22, %v820_v62 }
 0x2ac   :  { %v675_v34 = vpop.permute.xlu0 %674 }
 0x2ad   :  { %947 = vrot.lane.b32.xlu2 %v2997_v41, %s2467_s0  ;;  %v1127_v55 = vrot.slane %v900_v32, 4 }
 0x2af   :  { %999 = vrot.lane.b32.xlu1 %v3004_v21, %s2454_s29  ;;  %v667_v60 = vpop.permute.xlu1 %666  ;;  %987 = vrot.lane.b32.xlu0 %v2981_v57, %s2454_s29  ;;  %v727_v62 = vpop.permute.xlu2 %726 }
 0x2b4   :  { %v723_v52 = vpop.permute.xlu0 %722 }
 0x2b5   :  { %v758_v27 = vsel %vm744_vm9, %v675_v34, %v723_v52  ;;  %995 = vrot.lane.b32.xlu2 %v2997_v41, %s2454_s29  ;;  %v818_v52 = vmul.f32 %v3014_v33, %v2755_v8  ;;  %v824_v8 = vmul.f32 %v3032_v36, %v2769_v11 }
 0x2b6   :  { %v886_v17 = vmul.f32 %v3012_v50, %v758_v27 }
 0x2b7   :  { %648 = vrot.lane.b32.xlu1 %v2673_v38, %s2467_s0  ;;  %v715_v22 = vpop.permute.xlu1 %714  ;;  %951 = vrot.lane.b32.xlu0 %v3004_v21, %s2467_s0 }
 0x2b8   :  { %v902_v29 = vadd.f32 %v886_v17, %v822_v3  ;;  %v754_v34 = vsel %vm744_vm9, %v667_v60, %v715_v22 }
 0x2b9   :  { %v882_v10 = vmul.f32 %v3019_v59, %v754_v34 }
 0x2bb   :  { %v898_v6 = vadd.f32 %v882_v10, %v818_v52 }
 0x2bd   :  { %v3035_v27 = vsel %vm268_vm8, %v1127_v55, %v898_v6  ;;  %720 = vrot.lane.b32.xlu2 %v2732_v0, %s2454_s29 }
 0x2be   :  { %3491 = vst [vmem:[#allocation20_spill] sm:$0xff] %v3035_v27  ;;  %v3066_v27 = vld [vmem:[#allocation5] ss:$0 sm:$0xff] }
 0x2bf   :  { %712 = vrot.lane.b32.xlu1 %v2737_v1, %s2454_s29  ;;  %v679_v60 = vpop.permute.xlu1 %678  ;;  %v926_v3 = vpop.permute.xlu2 %925  ;;  %716 = vrot.lane.b32.xlu0 %v2709_v53, %s2454_s29 }
 0x2c0   :  { %v760_v10 = vsel %vm744_vm9, %v679_v60, %v727_v62  ;;  %v1035_v62 = vmul.f32 %v2846_v12, %v2784_v26 }
 0x2c1   :  { %v888_v55 = vmul.f32 %v3039_v51, %v760_v10 }
 0x2c3   :  { %v904_v32 = vadd.f32 %v888_v55, %v824_v8  ;;  %v3060_v8 = vld [vmem:[#allocation7] ss:$0 sm:$0xff] }
 0x2c5   :  { %v1139_v17 = vrot.slane %v904_v32, 4  ;;  %696 = vrot.lane.b32.xlu2 %v2673_v38, %s2454_s29 }
 0x2c7   :  { %v3052_v22 = vsel %vm268_vm8, %v1139_v17, %v902_v29  ;;  %v974_v34 = vpop.permute.xlu2 %973  ;;  %664 = vrot.lane.b32.xlu0 %v2737_v1, %s2467_s0  ;;  %v1040_v29 = vmul.f32 %v2891_v4, %v2813_v44 }
 0x2c8   :  { %v1019_v52 = vsel %vm744_vm9, %v926_v3, %v974_v34 }
 0x2c9   :  { %v1051_v11 = vmul.f32 %v2848_v14, %v1019_v52  ;;  %v1033_v14 = vmul.f32 %v3066_v27, %v2791_v30 }
 0x2cb   :  { %v1067_v6 = vadd.f32 %v1051_v11, %v1035_v62 }
 0x2cd   :  { %v1165_v52 = vrot.slane %v1067_v6, 4  ;;  %v1036_v6 = vmul.f32 %v2850_v15, %v2805_v39 }
 0x2cf   :  { %v936_v60 = vpop.permute.xlu2 %935 }
 0x2d7   :  { %v984_v10 = vpop.permute.xlu2 %983 }
 0x2d8   :  { %v1024_v55 = vsel %vm744_vm9, %v936_v60, %v984_v10 }
 0x2d9   :  { %v1056_v32 = vmul.f32 %v2901_v5, %v1024_v55  ;;  %v970_v17 = vpop.permute.xlu1 %969  ;;  %v922_v3 = vpop.permute.xlu0 %921  ;;  %v1038_v55 = vmul.f32 %v2935_v54, %v2857_v20 }
 0x2da   :  { %v1017_v26 = vsel %vm744_vm9, %v922_v3, %v970_v17  ;;  %v1039_v17 = vmul.f32 %v2817_v47, %v2800_v37 }
 0x2db   :  { %v1072_v12 = vadd.f32 %v1056_v32, %v1040_v29  ;;  %v1049_v34 = vmul.f32 %v3060_v8, %v1017_v26 }
 0x2dd   :  { %v1065_v62 = vadd.f32 %v1049_v34, %v1033_v14  ;;  %v1183_v14 = vrot.slane %v1072_v12, 4 }
 0x2df   :  { %v3073_v11 = vsel %vm268_vm8, %v1165_v52, %v1065_v62  ;;  %v932_v44 = vpop.permute.xlu2 %931 }
 0x2e1   :  { %v934_v4 = vpop.permute.xlu1 %933  ;;  %v928_v5 = vpop.permute.xlu0 %927 }
 0x2e7   :  { %v980_v60 = vpop.permute.xlu2 %979 }
 0x2e8   :  { %v1022_v10 = vsel %vm744_vm9, %v932_v44, %v980_v60 }
 0x2e9   :  { %v1054_v29 = vmul.f32 %v2937_v28, %v1022_v10  ;;  %v982_v32 = vpop.permute.xlu1 %981  ;;  %v976_v30 = vpop.permute.xlu0 %975  ;;  %v3088_v10 = vld [vmem:[#allocation7 + $0xa] ss:$0 sm:$0xff] }
 0x2ea   :  { %v1023_v3 = vsel %vm744_vm9, %v934_v4, %v982_v32  ;;  %v1020_v26 = vsel %vm744_vm9, %v928_v5, %v976_v30  ;;  %v1037_v5 = vmul.f32 %v2865_v24, %v2832_v61 }
 0x2eb   :  { %v1070_v34 = vadd.f32 %v1054_v29, %v1038_v55  ;;  %v1055_v52 = vmul.f32 %v2819_v48, %v1023_v3  ;;  %v1052_v20 = vmul.f32 %v2863_v23, %v1020_v26  ;;  %v1034_v23 = vmul.f32 %v2918_v35, %v2837_v63 }
 0x2ed   :  { %v1184_v54 = vsel %vm268_vm8, %v1183_v14, %v1070_v34  ;;  %v1071_v28 = vadd.f32 %v1055_v52, %v1039_v17  ;;  %v1068_v62 = vadd.f32 %v1052_v20, %v1036_v6  ;;  %v3100_v17 = vld [vmem:[#allocation5 + $0xa] ss:$0 sm:$0xff] }
 0x2ee   :  { %v1188_v32 = vperm.slane %v1184_v54, %v2641_v13  ;;  %v1043_v63 = vmul.f32 %v3100_v17, %v2907_v58  ;;  %v1170_v58 = vperm.slane %v3073_v11, %v2641_v13 }
 0x2ef   :  { %v942_v44 = vpop.permute.xlu2 %941  ;;  %v1177_v30 = vrot.slane %v1071_v28, 4  ;;  %v1171_v6 = vrot.slane %v1068_v62, 4  ;;  %v3111_v28 = vld [vmem:[#allocation5 + $0x8] ss:$0 sm:$0xff] }
 0x2f1   :  { %v930_v60 = vpop.permute.xlu1 %929  ;;  %v924_v39 = vpop.permute.xlu0 %923 }
 0x2f7   :  { %v990_v15 = vpop.permute.xlu2 %989 }
 0x2f8   :  { %v1027_v4 = vsel %vm744_vm9, %v942_v44, %v990_v15  ;;  %v1041_v15 = vmul.f32 %v3111_v28, %v2904_v16 }
 0x2f9   :  { %v978_v37 = vpop.permute.xlu1 %977  ;;  %v972_v47 = vpop.permute.xlu0 %971  ;;  %v1059_v3 = vmul.f32 %v3088_v10, %v1027_v4 }
 0x2fa   :  { %v1021_v12 = vsel %vm744_vm9, %v930_v60, %v978_v37  ;;  %v1018_v48 = vsel %vm744_vm9, %v924_v39, %v972_v47 }
 0x2fb   :  { %v1053_v55 = vmul.f32 %v2867_v25, %v1021_v12  ;;  %v1050_v29 = vmul.f32 %v2922_v40, %v1018_v48  ;;  %v3107_v25 = vld [vmem:[#allocation7 + $0x8] ss:$0 sm:$0xff]  ;;  %v1195_v40 = vrot.slane %v1188_v32, 4  ;;  %v1075_v20 = vadd.f32 %v1059_v3, %v1043_v63 }
 0x2fd   :  { %v1069_v26 = vadd.f32 %v1053_v55, %v1037_v5  ;;  %v1066_v14 = vadd.f32 %v1050_v29, %v1034_v23  ;;  %v1205_v12 = vrot.slane %v1075_v20, 4 }
 0x2ff   :  { %v1178_v35 = vsel %vm268_vm8, %v1177_v30, %v1069_v26  ;;  %v1172_v61 = vsel %vm268_vm8, %v1171_v6, %v1066_v14  ;;  %v938_v24 = vpop.permute.xlu2 %937 }
 0x300   :  { %v1182_v34 = vperm.slane %v1178_v35, %v2641_v13  ;;  %v1176_v52 = vperm.slane %v1172_v61, %v2641_v13  ;;  %v2259_v61 = vld [vmem:[#allocation5 + $0xc] ss:$0 sm:$0xff] }
 0x301   :  { %v950_v54 = vpop.permute.xlu1 %949  ;;  %v986_v62 = vpop.permute.xlu0 %985 }
 0x302   :  { %v1189_v44 = vrot.slane %v1176_v52, 4  ;;  %v1025_v60 = vsel %vm744_vm9, %v938_v24, %v986_v62  ;;  %v1196_v39 = vsel %vm268_vm8, %v1195_v40, %v1182_v34  ;;  %v2260_v24 = vld [vmem:[#allocation7 + $0xc] ss:$0 sm:$0xff]  ;;  %v1047_v40 = vmul.f32 %v2950_v9, %v2899_v43 }
 0x303   :  { %v1057_v37 = vmul.f32 %v3107_v25, %v1025_v60  ;;  %v1200_v47 = vperm.slane %v1196_v39, %v2644_v18  ;;  %v821_v62 = vmul.f32 %v2259_v61, %v2732_v0  ;;  %v1045_v9 = vmul.f32 %v2259_v61, %v2948_v45 }
 0x304   :  { %v1190_v4 = vsel %vm268_vm8, %v1189_v44, %v1170_v58  ;;  %v809_v61 = vmul.f32 %v3066_v27, %v2673_v38  ;;  %v1092_v38 = vperm.slane %v2942_v2, %v2641_v13 }
 0x305   :  { %v1073_v48 = vadd.f32 %v1057_v37, %v1041_v15  ;;  %v1194_v23 = vperm.slane %v1190_v4, %v2644_v18  ;;  %v1201_v5 = vrot.slane %v1200_v47, 4  ;;  %v1133_v15 = vrot.slane %v2968_v31, 4 }
 0x307   :  { %v3124_v11 = vsel %vm268_vm8, %v1205_v12, %v1073_v48  ;;  %v948_v55 = vpop.permute.xlu2 %947  ;;  %v1203_v29 = vrot.slane %v1194_v23, 4  ;;  %v3127_v32 = vsel %vm268_vm8, %v1201_v5, %v1194_v23 }
 0x309   :  { %v998_v16 = vpop.permute.xlu1 %997  ;;  %v944_v30 = vpop.permute.xlu0 %943  ;;  %v3130_v6 = vsel %vm268_vm8, %v1200_v47, %v1203_v29 }
 0x30a   :  { %v1031_v63 = vsel %vm744_vm9, %v950_v54, %v998_v16  ;;  %v1144_v54 = vperm.slane %v3052_v22, %v2641_v13  ;;  %v1044_v22 = vmul.f32 %v2972_v56, %v2925_v49 }
 0x30b   :  { %v1063_v35 = vmul.f32 %v2952_v19, %v1031_v63 }
 0x30c   :  { %v1151_v12 = vrot.slane %v1144_v54, 4  ;;  %v1396_v54 = vlaneseq }
 0x30d   :  { %v1079_v20 = vadd.f32 %v1063_v35, %v1047_v40 }
 0x30f   :  { %v996_v3 = vpop.permute.xlu2 %995 }
 0x310   :  { %v1030_v49 = vsel %vm744_vm9, %v948_v55, %v996_v3 }
 0x311   :  { %v946_v26 = vpop.permute.xlu1 %945  ;;  %v992_v14 = vpop.permute.xlu0 %991  ;;  %v1062_v55 = vmul.f32 %v3012_v50, %v1030_v49 }
 0x312   :  { %v1028_v19 = vsel %vm744_vm9, %v944_v30, %v992_v14 }
 0x313   :  { %v1060_v47 = vmul.f32 %v2978_v7, %v1028_v19  ;;  %v1042_v7 = vmul.f32 %v3014_v33, %v2981_v57  ;;  %v1105_v19 = vrot.slane %v1092_v38, 4 }
 0x315   :  { %v1076_v5 = vadd.f32 %v1060_v47, %v1044_v22 }
 0x317   :  { %v721_v34 = vpop.permute.xlu2 %720 }
 0x318   :  { %v757_v52 = vsel %vm744_vm9, %v2999_v42, %v721_v34  ;;  %v1217_v42 = vrot.slane %v1079_v20, 4  ;;  %v1210_v34 = vperm.slane %v3124_v11, %v2641_v13  ;;  %v1081_v11 = vrot.slane %v2880_v46, 4 }
 0x319   :  { %v885_v58 = vmul.f32 %v2260_v24, %v757_v52  ;;  %v994_v44 = vpop.permute.xlu1 %993  ;;  %v940_v60 = vpop.permute.xlu0 %939  ;;  %v1048_v52 = vmul.f32 %v3032_v36, %v3004_v21 }
 0x31a   :  { %v1029_v39 = vsel %vm744_vm9, %v946_v26, %v994_v44  ;;  %v1211_v26 = vrot.slane %v1076_v5, 4 }
 0x31b   :  { %v901_v43 = vadd.f32 %v885_v58, %v821_v62  ;;  %v1061_v37 = vmul.f32 %v2260_v24, %v1029_v39  ;;  %v3492_v62 = vld [vmem:[#allocation19_spill] sm:$0xff]  ;;  %v1397_v39 = vshrl.u32 %v1396_v54, 7 }
 0x31c   :  { %v1046_v58 = vmul.f32 %v3492_v62, %v2997_v41  ;;  %v3494_v41 = vld [vmem:[#allocation17_spill] sm:$0xff] }
 0x31d   :  { %v1134_v0 = vsel %vm268_vm8, %v1133_v15, %v901_v43  ;;  %v1077_v4 = vadd.f32 %v1061_v37, %v1045_v9  ;;  %2216 = vset.pattern.permute.xlu0 %v1397_v39 }
 0x31e   :  { %v1138_v48 = vperm.slane %v1134_v0, %v2641_v13  ;;  %v1078_v36 = vadd.f32 %v1062_v55, %v1046_v58 }
 0x31f   :  { %v1218_v23 = vsel %vm268_vm8, %v1217_v42, %v1077_v4  ;;  %v697_v56 = vpop.permute.xlu2 %696  ;;  %v1404_v42 = vadd.s32 8, %v1397_v39 }
 0x320   :  { %v3152_v31 = vsel %vm268_vm8, %v1151_v12, %v1138_v48  ;;  %v1222_v12 = vperm.slane %v1218_v23, %v2641_v13 }
 0x321   :  { %v1000_v45 = vpop.permute.xlu1 %999  ;;  %v988_v29 = vpop.permute.xlu0 %987  ;;  %2217 = vset.pattern.permute.xlu2 %v1404_v42 }
 0x322   :  { %v1026_v16 = vsel %vm744_vm9, %v940_v60, %v988_v29 }
 0x323   :  { %v1058_v30 = vmul.f32 %v3019_v59, %v1026_v16  ;;  %v3196_v16 = vld [vmem:[%s3472_s1] ss:$0 sm:$0xff] }
 0x325   :  { %v1074_v14 = vadd.f32 %v1058_v30, %v1042_v7  ;;  %v819_v7 = vmul.f32 %v3100_v17, %v2709_v53  ;;  %v1245_v53 = vpack.c.bf16 %v3127_v32, %v3127_v32  ;;  %1400 = vperm.xlu0 %2216, %v3196_v16   ;;  %v817_v17 = vmul.f32 %v3111_v28, %v2737_v1 }
 0x327   :  { %v1212_v63 = vsel %vm268_vm8, %v1211_v26, %v1074_v14 }
 0x328   :  { %v1216_v35 = vperm.slane %v1212_v63, %v2641_v13 }
 0x329   :  { %v649_v24 = vpop.permute.xlu1 %648  ;;  %v952_v40 = vpop.permute.xlu0 %951  ;;  %1406 = vperm.xlu2 %2217, %v3196_v16  }
 0x32a   :  { %v1229_v57 = vrot.slane %v1216_v35, 4  ;;  %v745_v33 = vsel %vm744_vm9, %v649_v24, %v697_v56  ;;  %v1032_v59 = vsel %vm744_vm9, %v952_v40, %v1000_v45 }
 0x32b   :  { %v873_v3 = vmul.f32 %v3060_v8, %v745_v33  ;;  %v1064_v20 = vmul.f32 %v3039_v51, %v1032_v59  ;;  %v3493_v8 = vld [vmem:[#allocation18_spill] sm:$0xff] }
 0x32c   :  { %v1230_v27 = vsel %vm268_vm8, %v1229_v57, %v1210_v34  ;;  %v1116_v51 = vperm.slane %v3493_v8, %v2644_v18  ;;  %v3495_v34 = vld [vmem:[#allocation20_spill] sm:$0xff] }
 0x32d   :  { %v889_v44 = vadd.f32 %v873_v3, %v809_v61  ;;  %v1080_v60 = vadd.f32 %v1064_v20, %v1048_v52  ;;  %v1234_v47 = vperm.slane %v1230_v27, %v2644_v18  ;;  %v1132_v57 = vperm.slane %v3495_v34, %v2641_v13  ;;  %2228 = vset.pattern.permute.xlu0 %v1404_v42 }
 0x32e   :  { %v1117_v4 = vrot.slane %v1116_v51, 4  ;;  %v1336_v20 = vunpack.c.l.b16 %v1245_v53 }
 0x32f   :  { %v1082_v21 = vsel %vm268_vm8, %v1081_v11, %v889_v44  ;;  %v1223_v50 = vrot.slane %v1080_v60, 4  ;;  %v1243_v23 = vrot.slane %v1234_v47, 4  ;;  %v1145_v28 = vrot.slane %v1132_v57, 4 }
 0x330   :  { %v1086_v2 = vperm.slane %v1082_v21, %v2641_v13 }
 0x331   :  { %v1224_v15 = vsel %vm268_vm8, %v1223_v50, %v1078_v36  ;;  %v717_v46 = vpop.permute.xlu0 %716  ;;  %v713_v14 = vpop.permute.xlu1 %712 }
 0x332   :  { %v1228_v43 = vperm.slane %v1224_v15, %v2641_v13  ;;  %v755_v9 = vsel %vm744_vm9, %v3494_v41, %v717_v46  ;;  %v1106_v37 = vsel %vm268_vm8, %v1105_v19, %v1086_v2 }
 0x333   :  { %v1110_v0 = vperm.slane %v1106_v37, %v2644_v18  ;;  %v883_v22 = vmul.f32 %v3088_v10, %v755_v9  ;;  %v1247_v10 = vpack.c.bf16 %v3130_v6, %v3130_v6 }
 0x334   :  { %v1235_v48 = vrot.slane %v1228_v43, 4 }
 0x335   :  { %v1118_v5 = vsel %vm268_vm8, %v1117_v4, %v1110_v0  ;;  %v1119_v45 = vrot.slane %v1110_v0, 4  ;;  %v899_v63 = vadd.f32 %v883_v22, %v819_v7  ;;  %v1367_v33 = vunpack.c.l.b16 %v1247_v10 }
 0x336   :  { %v1236_v29 = vsel %vm268_vm8, %v1235_v48, %v1222_v12  ;;  %v1161_v36 = vpack.c.bf16 %v1118_v5, %v1118_v5 }
 0x337   :  { %v1240_v30 = vperm.slane %v1236_v29, %v2644_v18  ;;  %v1120_v26 = vsel %vm268_vm8, %v1116_v51, %v1119_v45  ;;  %v1121_v55 = vrot.slane %v899_v63, 4  ;;  %v254_v63 = vpop.f32.mrf.mxu1 }
 0x338   :  { %v1163_v8 = vpack.c.bf16 %v1120_v26, %v1120_v26  ;;  %v1331_v19 = vunpack.c.l.b16 %v1161_v36 }
 0x339   :  { %v665_v49 = vpop.permute.xlu0 %664  ;;  %v1244_v56 = vsel %vm268_vm8, %v1240_v30, %v1243_v23  ;;  %v1241_v35 = vrot.slane %v1240_v30, 4 }
 0x33a   :  { %v753_v61 = vsel %vm744_vm9, %v665_v49, %v713_v14  ;;  %v1248_v24 = vpack.c.bf16 %v1244_v56, %v1244_v56  ;;  %v1362_v46 = vunpack.c.l.b16 %v1163_v8  ;;  %v2298_v56 = vld [vmem:[%s3476_s5] sm:$0x3] }
 0x33b   :  { %v881_v40 = vmul.f32 %v3107_v25, %v753_v61  ;;  %v1242_v6 = vsel %vm268_vm8, %v1241_v35, %v1234_v47  ;;  %v1156_v25 = vperm.slane %v3152_v31, %v2644_v18  ;;  %v185_v35 = vperm.slane %v2298_v56, 1 }
 0x33c   :  { %v1368_v59 = vunpack.c.l.b16 %v1248_v24  ;;  %v1246_v52 = vpack.c.bf16 %v1242_v6, %v1242_v6 }
 0x33d   :  { %v897_v3 = vadd.f32 %v881_v40, %v817_v17  ;;  %v1157_v54 = vrot.slane %v1156_v25, 4  ;;  %v255_v24 = vadd.f32 %v254_v63, %v185_v35 }
 0x33e   :  { %v1369_v32 = vpack.c.b16 %v1368_v59, %v1367_v33  ;;  %v1337_v38 = vunpack.c.l.b16 %v1246_v52 }
 0x33f   :  { %v1122_v1 = vsel %vm268_vm8, %v1121_v55, %v897_v3  ;;  %v256_v49 = vpop.f32.mrf.mxu1 }
 0x340   :  { %v1126_v27 = vperm.slane %v1122_v1, %v2641_v13  ;;  %v1374_v11 = vsel %vm1339_vm10, %v1369_v32, 0  ;;  %v1338_v62 = vpack.c.b16 %v1337_v38, %v1336_v20  ;;  %v257_v61 = vadd.f32 %v256_v49, %v185_v35 }
 0x341   :  { %1383 = vmatpush.bf16.xpose.msrb.mxu0 %v1374_v11  ;;  %v496_v1 = vrot.slane %v255_v24, 4 }
 0x342   :  { %v1344_v58 = vsel %vm1339_vm10, %v1338_v62, 0  ;;  %v1146_v44 = vsel %vm268_vm8, %v1145_v28, %v1126_v27  ;;  %v548_v59 = vrot.slane %v257_v61, 4  ;;  %v501_v28 = vperm.slane %v255_v24, %v2641_v13 }
 0x343   :  { %1353 = vmatpush.bf16.xpose.msra.mxu2 %v1344_v58  ;;  %v1150_v60 = vperm.slane %v1146_v44, %v2644_v18  ;;  %v553_v27 = vperm.slane %v257_v61, %v2641_v13 }
 0x345   :  { %v1158_v21 = vsel %vm268_vm8, %v1157_v54, %v1150_v60  ;;  %v1159_v31 = vrot.slane %v1150_v60, 4  ;;  %v497_v60 = vsel %vm268_vm8, 0.0, %v496_v1 }
 0x346   :  { %v1162_v50 = vpack.c.bf16 %v1158_v21, %v1158_v21  ;;  %v518_v21 = vrot.slane %v501_v28, 4 }
 0x347   :  { %v1160_v51 = vsel %vm268_vm8, %v1156_v25, %v1159_v31  ;;  %v549_v25 = vsel %vm268_vm8, 0.0, %v548_v59  ;;  %v570_v31 = vrot.slane %v553_v27, 4 }
 0x348   :  { %v1332_v2 = vunpack.c.l.b16 %v1162_v50  ;;  %v1164_v39 = vpack.c.bf16 %v1160_v51, %v1160_v51  ;;  %v557_v11 = vperm.slane %v549_v25, %v2641_v13 }
 0x34a   :  { %v1333_v15 = vpack.c.b16 %v1332_v2, %v1331_v19  ;;  %v1363_v43 = vunpack.c.l.b16 %v1164_v39  ;;  %v505_v39 = vperm.slane %v497_v60, %v2641_v13 }
 0x34c   :  { %2082 = vmatmul.msk.bf16.vlgmr.msra.gmra.mxu2 %vm1339_vm10, %v1333_v15  ;;  %v1364_v41 = vpack.c.b16 %v1363_v43, %v1362_v46  ;;  %v582_v15 = vrot.slane %v557_v11, 4  ;;  %v530_v63 = vrot.slane %v505_v39, 4 }
 0x34e   :  { %2083 = vmatmul.msk.bf16.vlgmr.msrb.gmra.mxu0 %vm1339_vm10, %v1364_v41 }
 0x383   :  { %v1407_v48 = vpop.permute.xlu2 %1406 }
 0x384   :  { %vm1409_vm12 = vcmp.eq.s32.totalorder %v1407_v48, %v3196_v16 }
 0x397   :  { %v1401_v9 = vpop.permute.xlu0 %1400 }
 0x398   :  { %vm1408_vm11 = vcmp.eq.s32.totalorder %v1401_v9, %v3196_v16  ;;  %v2218_v16 = vpack.i.bf16 %v257_v61, %v255_v24 }
 0x3cb   :  { %v1385_v37 = vpop.f32.mrf.mxu0 }
 0x3cc   :  { %v1392_v42 = vmul.f32 0.17677669, %v1385_v37 }
 0x3ce   :  { %v1416_v47 = vsel %vm1408_vm11, %v1392_v42, -1e+09 }
 0x3cf   :  { %v1355_v0 = vpop.f32.mrf.mxu2  ;;  %v1424_v4 = vsel %vm744_vm9, %v1416_v47, -inf }
 0x3d0   :  { %v1390_v12 = vmul.f32 0.17677669, %v1355_v0  ;;  %1425 = vmax.xlane.f32.xlu0 %v1424_v4 }
 0x3d2   :  { %v1414_v22 = vsel %vm1408_vm11, %v1390_v12, -1e+09 }
 0x3d3   :  { %v1387_v5 = vpop.f32.mrf.mxu0  ;;  %v1418_v45 = vsel %vm744_vm9, %v1414_v22, -inf }
 0x3d4   :  { %v1393_v29 = vmul.f32 0.17677669, %v1387_v5  ;;  %1419 = vmax.xlane.f32.xlu1 %v1418_v45 }
 0x3d6   :  { %v1417_v23 = vsel %vm1409_vm12, %v1393_v29, -1e+09 }
 0x3d7   :  { %v1357_v7 = vpop.f32.mrf.mxu2  ;;  %v1427_v10 = vsel %vm744_vm9, %v1417_v23, -inf }
 0x3d8   :  { %v1391_v30 = vmul.f32 0.17677669, %v1357_v7 }
 0x3da   :  { %v1415_v26 = vsel %vm1409_vm12, %v1391_v30, -1e+09 }
 0x3db   :  { %v1421_v14 = vsel %vm744_vm9, %v1415_v26, -inf }
 0x3dc   :  { %1428 = vmax.xlane.f32.xlu1 %v1427_v10  ;;  %1422 = vmax.xlane.f32.xlu2 %v1421_v14 }
 0x3f4   :  { %2219 = vrot.lane.b32.xlu2 %v2218_v16, %s2464_s24 }
 0x443   :  { %v1426_v53 = vpop.xlane.xlu0 %1425 }
 0x444   :  { %v1432_v6 = vsub.f32 %v1416_v47, %v1426_v53 }
 0x446   :  { %v1438_v57 = vmul.f32 1.442695, %v1432_v6 }
 0x447   :  { %v1420_v17 = vpop.xlane.xlu1 %1419 }
 0x448   :  { %v1430_v40 = vsub.f32 %v1414_v22, %v1420_v17 }
 0x44a   :  { %v1434_v34 = vmul.f32 1.442695, %v1430_v40 }
 0x44c   :  { %2270 = vpow2.f32 %v1434_v34 }
 0x44d   :  { %2272 = vpow2.f32 %v1438_v57 }
 0x44f   :  { %v1423_v33 = vpop.xlane.xlu2 %1422  ;;  %v1429_v52 = vpop.xlane.xlu1 %1428 }
 0x450   :  { %v1431_v55 = vsub.f32 %v1415_v26, %v1423_v33  ;;  %v1433_v20 = vsub.f32 %v1417_v23, %v1429_v52 }
 0x452   :  { %v3238_v3 = vpop.eup %2270  ;;  %v1436_v32 = vmul.f32 1.442695, %v1431_v55  ;;  %v1440_v62 = vmul.f32 1.442695, %v1433_v20 }
 0x453   :  { %v1442_v38 = vsel %vm744_vm9, %v3238_v3, 0.0  ;;  %v3246_v44 = vpop.eup %2272 }
 0x454   :  { %1443 = vadd.xlane.f32.xlu1 %v1442_v38  ;;  %2274 = vpow2.f32 %v1436_v32  ;;  %v1448_v46 = vsel %vm744_vm9, %v3246_v44, 0.0 }
 0x455   :  { %2276 = vpow2.f32 %v1440_v62 }
 0x457   :  { %v2220_v58 = vpop.permute.xlu2 %2219 }
 0x458   :  { %v2222_v54 = vunpack.i.h.bf16 %v2220_v58  ;;  %v2221_v36 = vunpack.i.l.bf16 %v2220_v58 }
 0x45a   :  { %v558_v50 = vrot.slane %v2222_v54, 4  ;;  %v563_v8 = vperm.slane %v2222_v54, %v2641_v13  ;;  %v506_v51 = vrot.slane %v2221_v36, 4  ;;  %v511_v19 = vperm.slane %v2221_v36, %v2641_v13  ;;  %v3251_v2 = vpop.eup %2274 }
 0x45b   :  { %v1445_v22 = vsel %vm744_vm9, %v3251_v2, 0.0  ;;  %v3271_v14 = vpop.eup %2276 }
 0x45c   :  { %v559_v43 = vsel %vm268_vm8, 0.0, %v558_v50  ;;  %v568_v41 = vrot.slane %v563_v8, 4  ;;  %v571_v9 = vsel %vm268_vm8, %v563_v8, %v570_v31  ;;  %v507_v37 = vsel %vm268_vm8, 0.0, %v506_v51  ;;  %1449 = vadd.xlane.f32.xlu1 %v1448_v46  ;;  %1446 = vadd.xlane.f32.xlu0 %v1445_v22 }
 0x45d   :  { %v567_v42 = vperm.slane %v559_v43, %v2641_v13  ;;  %v579_v47 = vperm.slane %v571_v9, %v2644_v18  ;;  %v515_v0 = vperm.slane %v507_v37, %v2641_v13  ;;  %v516_v4 = vrot.slane %v511_v19, 4 }
 0x45e   :  { %v569_v12 = vsel %vm268_vm8, %v568_v41, %v553_v27  ;;  %v519_v48 = vsel %vm268_vm8, %v511_v19, %v518_v21  ;;  %v1451_v20 = vsel %vm744_vm9, %v3271_v14, 0.0 }
 0x45f   :  { %v575_v5 = vperm.slane %v569_v12, %v2644_v18  ;;  %v580_v45 = vrot.slane %v567_v42, 4  ;;  %v583_v29 = vsel %vm268_vm8, %v567_v42, %v582_v15  ;;  %v594_v7 = vrot.slane %v579_v47, 4 }
 0x460   :  { %v591_v30 = vperm.slane %v583_v29, %v2644_v18  ;;  %v517_v23 = vsel %vm268_vm8, %v516_v4, %v501_v28  ;;  %v527_v26 = vperm.slane %v519_v48, %v2644_v18  ;;  %v528_v10 = vrot.slane %v515_v0, 4 }
 0x461   :  { %v581_v49 = vsel %vm268_vm8, %v580_v45, %v557_v11  ;;  %v592_v56 = vrot.slane %v575_v5, 4  ;;  %v595_v35 = vsel %vm268_vm8, 0.0, %v594_v7  ;;  %v523_v53 = vperm.slane %v517_v23, %v2644_v18 }
 0x462   :  { %v587_v61 = vperm.slane %v581_v49, %v2644_v18  ;;  %v598_v24 = vrot.slane %v591_v30, 4  ;;  %v1292_v16 = vrot.slane %v595_v35, 4  ;;  %v529_v40 = vsel %vm268_vm8, %v528_v10, %v505_v39 }
 0x463   :  { %v593_v17 = vsel %vm268_vm8, 0.0, %v592_v56  ;;  %v531_v6 = vsel %vm268_vm8, %v515_v0, %v530_v63  ;;  %v542_v34 = vrot.slane %v527_v26, 4  ;;  %v535_v59 = vperm.slane %v529_v40, %v2644_v18 }
 0x464   :  { %v596_v57 = vrot.slane %v587_v61, 4  ;;  %v599_v33 = vsel %vm268_vm8, 0.0, %v598_v24  ;;  %v539_v52 = vperm.slane %v531_v6, %v2644_v18  ;;  %v540_v55 = vrot.slane %v523_v53, 4  ;;  %1452 = vadd.xlane.f32.xlu0 %v1451_v20 }
 0x465   :  { %v543_v32 = vsel %vm268_vm8, 0.0, %v542_v34  ;;  %v1303_v38 = vrot.slane %v599_v33, 4  ;;  %v544_v1 = vrot.slane %v535_v59, 4  ;;  %v1249_v11 = vsel %vm268_vm8, %v542_v34, %v523_v53 }
 0x466   :  { %v546_v25 = vrot.slane %v539_v52, 4  ;;  %v1254_v28 = vrot.slane %v543_v32, 4  ;;  %v541_v27 = vsel %vm268_vm8, 0.0, %v540_v55  ;;  %v597_v62 = vsel %vm268_vm8, 0.0, %v596_v57 }
 0x467   :  { %v1293_v58 = vsel %vm268_vm8, %v1292_v16, %v593_v17  ;;  %v545_v54 = vsel %vm268_vm8, 0.0, %v544_v1  ;;  %v1287_v21 = vsel %vm268_vm8, %v594_v7, %v575_v5  ;;  %v1253_v51 = vperm.slane %v1249_v11, %v2641_v13 }
 0x468   :  { %v547_v60 = vsel %vm268_vm8, 0.0, %v546_v25  ;;  %v1255_v36 = vsel %vm268_vm8, %v1254_v28, %v541_v27  ;;  %v1297_v8 = vperm.slane %v1293_v58, %v2641_v13  ;;  %v1298_v19 = vsel %vm268_vm8, %v598_v24, %v587_v61 }
 0x469   :  { %v1265_v31 = vrot.slane %v547_v60, 4  ;;  %v1259_v50 = vperm.slane %v1255_v36, %v2641_v13  ;;  %v1304_v39 = vsel %vm268_vm8, %v1303_v38, %v597_v62  ;;  %v1260_v15 = vsel %vm268_vm8, %v546_v25, %v535_v59 }
 0x46a   :  { %v1308_v41 = vperm.slane %v1304_v39, %v2641_v13  ;;  %v1291_v37 = vperm.slane %v1287_v21, %v2641_v13  ;;  %v1309_v42 = vrot.slane %v1297_v8, 4  ;;  %v1302_v0 = vperm.slane %v1298_v19, %v2641_v13 }
 0x46b   :  { %v1266_v46 = vsel %vm268_vm8, %v1265_v31, %v545_v54  ;;  %v1271_v43 = vrot.slane %v1259_v50, 4  ;;  %v1264_v12 = vperm.slane %v1260_v15, %v2641_v13 }
 0x46c   :  { %v1270_v9 = vperm.slane %v1266_v46, %v2641_v13  ;;  %v1315_v4 = vrot.slane %v1308_v41, 4  ;;  %v1310_v5 = vsel %vm268_vm8, %v1309_v42, %v1291_v37 }
 0x46d   :  { %v1272_v47 = vsel %vm268_vm8, %v1271_v43, %v1253_v51  ;;  %v1314_v45 = vperm.slane %v1310_v5, %v2644_v18 }
 0x46e   :  { %v1276_v48 = vperm.slane %v1272_v47, %v2644_v18  ;;  %v1277_v22 = vrot.slane %v1270_v9, 4  ;;  %v1316_v29 = vsel %vm268_vm8, %v1315_v4, %v1302_v0 }
 0x46f   :  { %v1320_v23 = vperm.slane %v1316_v29, %v2644_v18  ;;  %v1323_v10 = vrot.slane %v1314_v45, 4 }
 0x470   :  { %v1278_v7 = vsel %vm268_vm8, %v1277_v22, %v1264_v12  ;;  %v1285_v30 = vrot.slane %v1276_v48, 4  ;;  %v2182_v12 = vld [vmem:[%s3477_s6 + $0x18] sm:$0xff] }
 0x471   :  { %v1282_v26 = vperm.slane %v1278_v7, %v2644_v18  ;;  %v1321_v63 = vrot.slane %v1320_v23, 4  ;;  %v1324_v56 = vsel %vm268_vm8, %v1320_v23, %v1323_v10  ;;  %1756 = vmatpush.bf16.msra.mxu0 %v2182_v12  ;;  %v2181_v7 = vld [vmem:[%s3477_s6 + $0x10] sm:$0xff] }
 0x472   :  { %v1328_v24 = vpack.c.bf16 %v1324_v56, %v1324_v56 }
 0x473   :  { %v1286_v49 = vsel %vm268_vm8, %v1282_v26, %v1285_v30  ;;  %v1283_v35 = vrot.slane %v1282_v26, 4  ;;  %v1322_v16 = vsel %vm268_vm8, %v1321_v63, %v1314_v45 }
 0x474   :  { %v1327_v61 = vpack.c.bf16 %v1286_v49, %v1286_v49  ;;  %v1326_v17 = vpack.c.bf16 %v1322_v16, %v1322_v16  ;;  %v1502_v6 = vunpack.c.l.b16 %v1328_v24 }
 0x475   :  { %v1284_v53 = vsel %vm268_vm8, %v1283_v35, %v1276_v48  ;;  %1757 = vmatpush.bf16.msra.mxu0 %v2181_v7 }
 0x476   :  { %v1501_v40 = vunpack.c.l.b16 %v1327_v61  ;;  %v1325_v34 = vpack.c.bf16 %v1284_v53, %v1284_v53  ;;  %v1474_v57 = vunpack.c.l.b16 %v1326_v17 }
 0x478   :  { %v1503_v33 = vpack.c.b16 %v1502_v6, %v1501_v40  ;;  %v1473_v59 = vunpack.c.l.b16 %v1325_v34  ;;  %v2180_v40 = vld [vmem:[%s3477_s6 + $0x8] sm:$0xff] }
 0x479   :  { %1758 = vmatpush.bf16.msra.mxu0 %v2180_v40 }
 0x47a   :  { %1515 = vmatpush.bf16.msra.mxu3 %v1503_v33  ;;  %v1475_v52 = vpack.c.b16 %v1474_v57, %v1473_v59 }
 0x47c   :  { %1487 = vmatpush.bf16.msrb.mxu2 %v1475_v52 }
 0x4c7   :  { %v1444_v55 = vpop.xlane.xlu1 %1443 }
 0x4c8   :  { %2278 = vrcp.f32 %v1444_v55 }
 0x4ce   :  { %v2279_v38 = vpop.eup %2278 }
 0x4cf   :  { %v1450_v32 = vpop.xlane.xlu1 %1449  ;;  %v1447_v20 = vpop.xlane.xlu0 %1446  ;;  %v1458_v1 = vmul.f32 %v2279_v38, %v3238_v3 }
 0x4d0   :  { %2280 = vrcp.f32 %v1447_v20 }
 0x4d1   :  { %2282 = vrcp.f32 %v1450_v32  ;;  %v1462_v28 = vpack.c.bf16 %v1458_v1, %v1458_v1 }
 0x4d3   :  { %v1468_v60 = vunpack.c.l.b16 %v1462_v28 }
 0x4d6   :  { %v2281_v25 = vpop.eup %2280 }
 0x4d7   :  { %v1459_v27 = vmul.f32 %v2281_v25, %v3251_v2  ;;  %v1453_v11 = vpop.xlane.xlu0 %1452  ;;  %v2283_v62 = vpop.eup %2282 }
 0x4d8   :  { %2284 = vrcp.f32 %v1453_v11  ;;  %v1460_v36 = vmul.f32 %v2283_v62, %v3246_v44 }
 0x4d9   :  { %v1463_v58 = vpack.c.bf16 %v1459_v27, %v1459_v27 }
 0x4da   :  { %v1464_v8 = vpack.c.bf16 %v1460_v36, %v1460_v36 }
 0x4db   :  { %v1469_v54 = vunpack.c.l.b16 %v1463_v58 }
 0x4dc   :  { %v1496_v51 = vunpack.c.l.b16 %v1464_v8 }
 0x4dd   :  { %v1470_v21 = vpack.c.b16 %v1469_v54, %v1468_v60 }
 0x4de   :  { %v2285_v31 = vpop.eup %2284 }
 0x4df   :  { %2084 = vmatmul.msk.bf16.vlgmr.msrb.gmra.mxu2 %vm744_vm9, %v1470_v21  ;;  %v1461_v50 = vmul.f32 %v2285_v31, %v3271_v14 }
 0x4e1   :  { %v1465_v3 = vpack.c.bf16 %v1461_v50, %v1461_v50 }
 0x4e3   :  { %v1497_v19 = vunpack.c.l.b16 %v1465_v3 }
 0x4e5   :  { %v1498_v39 = vpack.c.b16 %v1497_v19, %v1496_v51 }
 0x4e7   :  { %2085 = vmatmul.msk.bf16.vlgmr.msra.gmra.mxu3 %vm744_vm9, %v1498_v39 }
 0x562   :  { %v1489_v2 = vpop.f32.mrf.mxu2 }
 0x563   :  { %v1522_v15 = vrot.slane %v1489_v2, 4  ;;  %v1527_v43 = vperm.slane %v1489_v2, %v2641_v13 }
 0x565   :  { %v1523_v46 = vsel %vm268_vm8, 0.0, %v1522_v15  ;;  %v1544_v42 = vrot.slane %v1527_v43, 4 }
 0x566   :  { %v1531_v44 = vperm.slane %v1523_v46, %v2641_v13 }
 0x568   :  { %v1556_v48 = vrot.slane %v1531_v44, 4 }
 0x56a   :  { %v1491_v41 = vpop.f32.mrf.mxu2  ;;  %v1517_v9 = vpop.f32.mrf.mxu3 }
 0x56b   :  { %v1532_v37 = vrot.slane %v1517_v9, 4  ;;  %v1537_v14 = vperm.slane %v1517_v9, %v2641_v13  ;;  %v1574_v47 = vrot.slane %v1491_v41, 4  ;;  %v1579_v56 = vperm.slane %v1491_v41, %v2641_v13 }
 0x56d   :  { %v1533_v0 = vsel %vm268_vm8, 0.0, %v1532_v37  ;;  %v1542_v4 = vrot.slane %v1537_v14, 4  ;;  %v1545_v5 = vsel %vm268_vm8, %v1537_v14, %v1544_v42  ;;  %v1575_v10 = vsel %vm268_vm8, 0.0, %v1574_v47 }
 0x56e   :  { %v1541_v22 = vperm.slane %v1533_v0, %v2641_v13  ;;  %v1553_v29 = vperm.slane %v1545_v5, %v2644_v18  ;;  %v1583_v6 = vperm.slane %v1575_v10, %v2641_v13  ;;  %v1596_v32 = vrot.slane %v1579_v56, 4 }
 0x56f   :  { %v1543_v45 = vsel %vm268_vm8, %v1542_v4, %v1527_v43 }
 0x570   :  { %v1549_v30 = vperm.slane %v1543_v45, %v2644_v18  ;;  %v1554_v23 = vrot.slane %v1541_v22, 4  ;;  %v1557_v26 = vsel %vm268_vm8, %v1541_v22, %v1556_v48  ;;  %v1568_v49 = vrot.slane %v1553_v29, 4 }
 0x571   :  { %v1565_v63 = vperm.slane %v1557_v26, %v2644_v18  ;;  %v1608_v62 = vrot.slane %v1583_v6, 4 }
 0x572   :  { %v1555_v35 = vsel %vm268_vm8, %v1554_v23, %v1531_v44  ;;  %v1566_v61 = vrot.slane %v1549_v30, 4  ;;  %v1519_v24 = vpop.f32.mrf.mxu3  ;;  %v1569_v53 = vsel %vm268_vm8, 0.0, %v1568_v49  ;;  %v1626_v54 = vsel %vm268_vm8, %v1568_v49, %v1549_v30 }
 0x573   :  { %v1561_v16 = vperm.slane %v1555_v35, %v2644_v18  ;;  %v1572_v17 = vrot.slane %v1565_v63, 4  ;;  %v1631_v57 = vrot.slane %v1569_v53, 4  ;;  %v1584_v33 = vrot.slane %v1519_v24, 4 }
 0x574   :  { %v1567_v34 = vsel %vm268_vm8, 0.0, %v1566_v61  ;;  %v1589_v55 = vperm.slane %v1519_v24, %v2641_v13  ;;  %v1630_v41 = vperm.slane %v1626_v54, %v2641_v13 }
 0x575   :  { %v1570_v59 = vrot.slane %v1561_v16, 4  ;;  %v1573_v52 = vsel %vm268_vm8, 0.0, %v1572_v17  ;;  %v1632_v20 = vsel %vm268_vm8, %v1631_v57, %v1567_v34  ;;  %v1585_v1 = vsel %vm268_vm8, 0.0, %v1584_v33 }
 0x576   :  { %v1642_v38 = vrot.slane %v1573_v52, 4  ;;  %v1636_v28 = vperm.slane %v1632_v20, %v2641_v13  ;;  %v1593_v27 = vperm.slane %v1585_v1, %v2641_v13  ;;  %v1594_v11 = vrot.slane %v1589_v55, 4 }
 0x577   :  { %v1571_v25 = vsel %vm268_vm8, 0.0, %v1570_v59  ;;  %v1597_v58 = vsel %vm268_vm8, %v1589_v55, %v1596_v32  ;;  %v1637_v50 = vsel %vm268_vm8, %v1572_v17, %v1561_v16 }
 0x578   :  { %v1643_v60 = vsel %vm268_vm8, %v1642_v38, %v1571_v25  ;;  %v1595_v36 = vsel %vm268_vm8, %v1594_v11, %v1579_v56  ;;  %v1605_v21 = vperm.slane %v1597_v58, %v2644_v18  ;;  %v1606_v31 = vrot.slane %v1593_v27, 4  ;;  %v2299_v58 = vld [vmem:[#allocation2] sm:$0xff] }
 0x579   :  { %v1601_v8 = vperm.slane %v1595_v36, %v2644_v18  ;;  %v1609_v3 = vsel %vm268_vm8, %v1593_v27, %v1608_v62  ;;  %v1647_v51 = vperm.slane %v1643_v60, %v2641_v13  ;;  %v1648_v19 = vrot.slane %v1636_v28, 4  ;;  %v2262_v27 = vld [vmem:[#allocation8] ss:$0 sm:$0xff] }
 0x57a   :  { %v1607_v39 = vsel %vm268_vm8, %v1606_v31, %v1583_v6  ;;  %v1617_v2 = vperm.slane %v1609_v3, %v2644_v18  ;;  %v1620_v15 = vrot.slane %v1605_v21, 4  ;;  %v1641_v14 = vperm.slane %v1637_v50, %v2641_v13  ;;  %v2300_v31 = vld [vmem:[#allocation2 + $0x8] sm:$0xff] }
 0x57b   :  { %v1613_v46 = vperm.slane %v1607_v39, %v2644_v18  ;;  %v1618_v43 = vrot.slane %v1601_v8, 4  ;;  %v1654_v44 = vrot.slane %v1647_v51, 4  ;;  %v1649_v48 = vsel %vm268_vm8, %v1648_v19, %v1630_v41  ;;  %v3496_v51 = vld [vmem:[#allocation16_spill] sm:$0xff] }
 0x57c   :  { %v1621_v9 = vsel %vm268_vm8, 0.0, %v1620_v15  ;;  %v1624_v37 = vrot.slane %v1617_v2, 4  ;;  %v1664_v12 = vsel %vm268_vm8, %v1620_v15, %v1601_v8  ;;  %v1653_v26 = vperm.slane %v1649_v48, %v2644_v18  ;;  %v2188_v48 = vld [vmem:[#allocation10 + $0x24] sm:$0xf0] }
 0x57d   :  { %v1619_v42 = vsel %vm268_vm8, 0.0, %v1618_v43  ;;  %v1622_v47 = vrot.slane %v1613_v46, 4  ;;  %v1669_v0 = vrot.slane %v1621_v9, 4  ;;  %v1655_v22 = vsel %vm268_vm8, %v1654_v44, %v1641_v14  ;;  %v2190_v14 = vld [vmem:[#allocation10 + $0x34] sm:$0xf0] }
 0x57e   :  { %v1625_v4 = vsel %vm268_vm8, 0.0, %v1624_v37  ;;  %v1659_v7 = vperm.slane %v1655_v22, %v2644_v18  ;;  %v1675_v23 = vsel %vm268_vm8, %v1624_v37, %v1613_v46  ;;  %v1668_v49 = vperm.slane %v1664_v12, %v2641_v13  ;;  %v2129_v37 = vld [vmem:[#allocation10 + $0x30] sm:$0xf]  ;;  %v2121_v12 = vld [vmem:[#allocation10 + $0x20] sm:$0xf] }
 0x57f   :  { %v1623_v5 = vsel %vm268_vm8, 0.0, %v1622_v47  ;;  %v1670_v45 = vsel %vm268_vm8, %v1669_v0, %v1619_v42  ;;  %v1680_v29 = vrot.slane %v1625_v4, 4  ;;  %v1679_v24 = vperm.slane %v1675_v23, %v2641_v13  ;;  %v2189_v42 = vld [vmem:[#allocation10 + $0x34] sm:$0xf]  ;;  %v2131_v0 = vld [vmem:[#allocation10 + $0x38] sm:$0xf0] }
 0x580   :  { %v1674_v30 = vperm.slane %v1670_v45, %v2641_v13  ;;  %v1660_v10 = vrot.slane %v1659_v7, 4  ;;  %v1662_v17 = vrot.slane %v1653_v26, 4  ;;  %v2130_v47 = vor.u32 %v2190_v14, %v2129_v37  ;;  %v2187_v22 = vld [vmem:[#allocation10 + $0x24] sm:$0xf]  ;;  %v2123_v45 = vld [vmem:[#allocation10 + $0x28] sm:$0xf0] }
 0x581   :  { %v1681_v63 = vsel %vm268_vm8, %v1680_v29, %v1623_v5  ;;  %v2134_v4 = vor.u32 %v2189_v42, %v2131_v0  ;;  %v2122_v5 = vor.u32 %v2188_v48, %v2121_v12  ;;  %v2126_v29 = vor.u32 %v2187_v22, %v2123_v45  ;;  %v2185_v23 = vld [vmem:[#allocation10 + $0x14] sm:$0xf] }
 0x582   :  { %v1686_v56 = vrot.slane %v1674_v30, 4  ;;  %v1685_v35 = vperm.slane %v1681_v63, %v2641_v13  ;;  %v1661_v61 = vsel %vm268_vm8, %v1660_v10, %v1653_v26  ;;  %v1663_v33 = vsel %vm268_vm8, %v1659_v7, %v1662_v17  ;;  %v2179_v13 = vld [vmem:[%s3477_s6] sm:$0xff]  ;;  %1874 = vmatpush.bf16.msrb.mxu1 %v2130_v47  ;;  %v2186_v30 = vld [vmem:[#allocation10 + $0x14] sm:$0xf0]  ;;  %v2115_v10 = vld [vmem:[#allocation10 + $0x18] sm:$0xf0] }
 0x583   :  { %1759 = vmatpush.bf16.msra.mxu0 %v2179_v13  ;;  %1888 = vmatpush.bf16.msra.mxu2 %v2134_v4  ;;  %v2113_v7 = vld [vmem:[#allocation10 + $0x10] sm:$0xf]  ;;  %v2118_v63 = vor.u32 %v2185_v23, %v2115_v10 }
 0x584   :  { %v1687_v16 = vsel %vm268_vm8, %v1686_v56, %v1668_v49  ;;  %v1692_v53 = vrot.slane %v1685_v35, 4  ;;  %v2114_v26 = vor.u32 %v2186_v30, %v2113_v7  ;;  %v2105_v49 = vld [vmem:[#allocation10] sm:$0xf]  ;;  %v2184_v56 = vld [vmem:[#allocation10 + $0x4] sm:$0xf0] }
 0x585   :  { %v1691_v40 = vperm.slane %v1687_v16, %v2644_v18  ;;  %v2183_v35 = vld [vmem:[#allocation10 + $0x4] sm:$0xf] }
 0x586   :  { %v1693_v6 = vsel %vm268_vm8, %v1692_v53, %v1679_v24  ;;  %1875 = vmatpush.bf16.msrb.mxu1 %v2122_v5  ;;  %v2107_v24 = vld [vmem:[#allocation10 + $0x8] sm:$0xf0] }
 0x587   :  { %v1697_v34 = vperm.slane %v1693_v6, %v2644_v18  ;;  %v1700_v57 = vrot.slane %v1691_v40, 4  ;;  %1889 = vmatpush.bf16.msra.mxu2 %v2126_v29  ;;  %v2110_v53 = vor.u32 %v2183_v35, %v2107_v24 }
 0x589   :  { %v1701_v59 = vsel %vm268_vm8, %v1697_v34, %v1700_v57  ;;  %v1698_v52 = vrot.slane %v1697_v34, 4 }
 0x58a   :  { %v2223_v55 = vpack.i.bf16 %v1701_v59, %v1663_v33  ;;  %1876 = vmatpush.bf16.msrb.mxu1 %v2114_v26 }
 0x58b   :  { %v1699_v32 = vsel %vm268_vm8, %v1698_v52, %v1691_v40  ;;  %1890 = vmatpush.bf16.msra.mxu2 %v2118_v63 }
 0x58c   :  { %2224 = vrot.lane.b32.xlu1 %v2223_v55, %s2468_s13  ;;  %s2033_s13 = sshll.u32 %s3483_s12, 4  ;;  %s2034_s13 = int_to_ptr.hbm [resolvable:$true] %s2033_s13 }
 0x58f   :  { %1891 = vmatpush.bf16.msra.mxu2 %v2110_v53 }
 0x5fe   :  { %v2225_v20 = vpop.permute.xlu1 %2224 }
 0x5ff   :  { %v2227_v38 = vunpack.i.h.bf16 %v2225_v20  ;;  %v2226_v1 = vunpack.i.l.bf16 %v2225_v20 }
 0x601   :  { %v1710_v18 = vsel %vm1339_vm10, %v1661_v61, %v2226_v1  ;;  %v1711_v25 = vsel %vm1339_vm10, %v1699_v32, %v2227_v38  ;;  %v2106_v61 = vor.u32 %v2184_v56, %v2105_v49 }
 0x602   :  { %v1712_v28 = vpack.c.bf16 %v1711_v25, %v1710_v18 }
 0x603   :  { %1877 = vmatpush.bf16.msrb.mxu1 %v2106_v61 }
 0x604   :  { %2102 = vmatmul.msk.bf16.vlgmr.msra.gmra.mxu0 %vm121_vm0, %v1712_v28 }
 0x681   :  { %v1761_v11 = vpop.f32.mrf.mxu0 }
 0x682   :  { %v1762_v62 = vadd.f32 %v2262_v27, %v1761_v11 }
 0x684   :  { %v3403_v60 = vadd.f32 %v2299_v58, %v1762_v62 }
 0x686   :  { %v1768_v54 = vsel %vm121_vm0, %v3403_v60, 0.0 }
 0x687   :  { %1769 = vadd.xlane.f32.xlu0 %v1768_v54 }
 0x689   :  { %v1763_v36 = vpop.f32.mrf.mxu0 }
 0x68a   :  { %v1764_v21 = vadd.f32 %v2262_v27, %v1763_v36  ;;  %v2198_v36 = vld [vmem:[%s3481_s10 + $0x38] sm:$0xff] }
 0x68b   :  { %2009 = vmatpush.bf16.msrb.mxu3 %v2198_v36 }
 0x68c   :  { %v3407_v50 = vadd.f32 %v2300_v31, %v1764_v21  ;;  %v2197_v21 = vld [vmem:[%s3481_s10 + $0x30] sm:$0xff]  ;;  %v2196_v31 = vld [vmem:[%s3481_s10 + $0x28] sm:$0xff] }
 0x68e   :  { %v1771_v8 = vsel %vm121_vm0, %v3407_v50, 0.0 }
 0x68f   :  { %1772 = vadd.xlane.f32.xlu2 %v1771_v8  ;;  %2010 = vmatpush.bf16.msrb.mxu3 %v2197_v21  ;;  %v2195_v8 = vld [vmem:[%s3481_s10 + $0x20] sm:$0xff] }
 0x693   :  { %2011 = vmatpush.bf16.msrb.mxu3 %v2196_v31 }
 0x697   :  { %2012 = vmatpush.bf16.msrb.mxu3 %v2195_v8 }
 0x6fa   :  { %v1770_v3 = vpop.xlane.xlu0 %1769 }
 0x6fb   :  { %v1774_v19 = vmul.f32 %v1770_v3, %v3496_v51  ;;  %v1821_v3 = vld [vmem:[%s3480_s9] sm:$0x3] }
 0x6fc   :  { %v1824_v24 = vperm.slane %v1821_v3, 1 }
 0x6fd   :  { %v3413_v39 = vsub.f32 %v3403_v60, %v1774_v19  ;;  %v2194_v19 = vld [vmem:[%s3481_s10 + $0x18] sm:$0xff] }
 0x6fe   :  { %2013 = vmatpush.bf16.msrb.mxu3 %v2194_v19 }
 0x6ff   :  { %v1778_v2 = vmul.f32 %v3413_v39, %v3413_v39 }
 0x701   :  { %v1780_v15 = vsel %vm121_vm0, %v1778_v2, 0.0 }
 0x702   :  { %v1773_v46 = vpop.xlane.xlu2 %1772  ;;  %1781 = vadd.xlane.f32.xlu0 %v1780_v15  ;;  %v2193_v15 = vld [vmem:[%s3481_s10 + $0x10] sm:$0xff] }
 0x703   :  { %v1775_v43 = vmul.f32 %v1773_v46, %v3496_v51  ;;  %2014 = vmatpush.bf16.msrb.mxu3 %v2193_v15 }
 0x705   :  { %v3420_v44 = vsub.f32 %v3407_v50, %v1775_v43  ;;  %v2192_v43 = vld [vmem:[%s3481_s10 + $0x8] sm:$0xff] }
 0x707   :  { %v1779_v41 = vmul.f32 %v3420_v44, %v3420_v44  ;;  %2015 = vmatpush.bf16.msrb.mxu3 %v2192_v43 }
 0x709   :  { %v1783_v9 = vsel %vm121_vm0, %v1779_v41, 0.0 }
 0x70a   :  { %1784 = vadd.xlane.f32.xlu0 %v1783_v9  ;;  %v2191_v9 = vld [vmem:[%s3481_s10] sm:$0xff] }
 0x70b   :  { %2016 = vmatpush.bf16.msrb.mxu3 %v2191_v9 }
 0x775   :  { %v1782_v16 = vpop.xlane.xlu0 %1781 }
 0x776   :  { %v1786_v17 = vmul.f32 %v1782_v16, %v3496_v51 }
 0x778   :  { %v1788_v40 = vadd.f32 1e-06, %v1786_v17 }
 0x77a   :  { %2286 = vrsqrt.f32 %v1788_v40  ;;  %vm1796_vm14 = vweird.f32 %v1788_v40 }
 0x77d   :  { %v1785_v6 = vpop.xlane.xlu0 %1784 }
 0x77e   :  { %v1787_v34 = vmul.f32 %v1785_v6, %v3496_v51  ;;  %v1823_v51 = vperm.slane %v1821_v3, 0 }
 0x780   :  { %v2287_v57 = vpop.eup %2286  ;;  %v1789_v33 = vadd.f32 1e-06, %v1787_v34 }
 0x781   :  { %v1791_v59 = vmul.f32 %v2287_v57, %v1788_v40  ;;  %vm1797_vm13 = vweird.f32 %v2287_v57 }
 0x782   :  { %2288 = vrsqrt.f32 %v1789_v33  ;;  %vm1798_vm1 = vmor %vm1796_vm14, %vm1797_vm13  ;;  %vm1806_vm2 = vweird.f32 %v1789_v33 }
 0x783   :  { %v1792_v52 = vmul.f32 %v2287_v57, %v1791_v59 }
 0x785   :  { %v1793_v55 = vmul.f32 0.5, %v1792_v52 }
 0x787   :  { %v1794_v13 = vsub.f32 1.5, %v1793_v55 }
 0x788   :  { %v2289_v32 = vpop.eup %2288 }
 0x789   :  { %v1801_v20 = vmul.f32 %v2289_v32, %v1789_v33  ;;  %v1795_v1 = vmul.f32 %v2287_v57, %v1794_v13  ;;  %vm1807_vm15 = vweird.f32 %v2289_v32  ;;  %v2263_v13 = vld [vmem:[%s3482_s11] ss:$0 sm:$0xff] }
 0x78a   :  { %vm1808_vm3 = vmor %vm1806_vm2, %vm1807_vm15 }
 0x78b   :  { %v1802_v38 = vmul.f32 %v2289_v32, %v1801_v20  ;;  %v1799_v28 = vsel %vm1798_vm1, %v2287_v57, %v1795_v1 }
 0x78c   :  { %v1810_v62 = vmul.f32 %v1799_v28, %v3413_v39 }
 0x78d   :  { %v1803_v18 = vmul.f32 0.5, %v1802_v38 }
 0x78f   :  { %v1804_v25 = vsub.f32 1.5, %v1803_v18 }
 0x791   :  { %v1805_v27 = vmul.f32 %v2289_v32, %v1804_v25 }
 0x793   :  { %v1809_v11 = vsel %vm1808_vm3, %v2289_v32, %v1805_v27 }
 0x794   :  { %v1811_v58 = vmul.f32 %v1809_v11, %v3420_v44 }
 0x796   :  { %v1812_v54 = vpack.c.bf16 %v1811_v58, %v1810_v62 }
 0x798   :  { %2135 = vmatmul.msk.bf16.vlgmr.msrb.gmra.mxu1 %vm121_vm0, %v1812_v54  ;;  %2136 = vmatmul.msk.bf16.vlgmr.msra.gmra.mxu2 %vm121_vm0, %v1812_v54 }
 0x815   :  { %v1879_v39 = vpop.f32.mrf.mxu1 }
 0x816   :  { %v1880_v2 = vadd.f32 %v1879_v39, %v1823_v51 }
 0x818   :  { %v2137_v46 = vmul.f32 -1.442695, %v1880_v2 }
 0x81a   :  { %2290 = vpow2.f32 %v2137_v46 }
 0x81b   :  { %v1893_v5 = vpop.f32.mrf.mxu2 }
 0x81c   :  { %v1894_v57 = vadd.f32 %v1893_v5, %v1824_v24 }
 0x81d   :  { %v1881_v44 = vpop.f32.mrf.mxu1 }
 0x81e   :  { %v1882_v41 = vadd.f32 %v1881_v44, %v1823_v51 }
 0x820   :  { %v2291_v37 = vpop.eup %2290  ;;  %v2138_v14 = vmul.f32 -1.442695, %v1882_v41 }
 0x821   :  { %v1904_v42 = vadd.f32 1.0, %v2291_v37 }
 0x822   :  { %2292 = vpow2.f32 %v2138_v14 }
 0x823   :  { %2294 = vrcp.f32 %v1904_v42  ;;  %v1917_v7 = vand.u32 2147483648, %v1904_v42  ;;  %vm1911_vm5 = vweird.f32 %v1904_v42  ;;  %v1915_v30 = vand.u32 2147483647, %v1904_v42  ;;  %v1895_v17 = vpop.f32.mrf.mxu2 }
 0x824   :  { %v1896_v59 = vadd.f32 %v1895_v17, %v1824_v24 }
 0x825   :  { %v1918_v63 = vor.u32 1.1754944e-38, %v1917_v7  ;;  %vm1916_vm7 = vcmp.eq.f32.partialorder %v1915_v30, 8.507059e+37 }
 0x828   :  { %v2293_v47 = vpop.eup %2292 }
 0x829   :  { %v2295_v0 = vpop.eup %2294  ;;  %v1905_v4 = vadd.f32 1.0, %v2293_v47 }
 0x82a   :  { %v1907_v12 = vmul.f32 %v2295_v0, %v1904_v42  ;;  %vm1912_vm4 = vweird.f32 %v2295_v0 }
 0x82b   :  { %2296 = vrcp.f32 %v1905_v4  ;;  %vm1913_vm6 = vmor %vm1911_vm5, %vm1912_vm4  ;;  %v1932_v49 = vand.u32 2147483648, %v1905_v4  ;;  %v1930_v35 = vand.u32 2147483647, %v1905_v4  ;;  %vm1926_vm9 = vweird.f32 %v1905_v4 }
 0x82c   :  { %v1908_v48 = vsub.f32 1.0, %v1907_v12 }
 0x82d   :  { %v1933_v53 = vor.u32 1.1754944e-38, %v1932_v49  ;;  %vm1931_vm11 = vcmp.eq.f32.partialorder %v1930_v35, 8.507059e+37 }
 0x82e   :  { %v1909_v22 = vmul.f32 %v2295_v0, %v1908_v48 }
 0x830   :  { %v1910_v45 = vadd.f32 %v2295_v0, %v1909_v22 }
 0x831   :  { %v2297_v29 = vpop.eup %2296 }
 0x832   :  { %v1922_v23 = vmul.f32 %v2297_v29, %v1905_v4  ;;  %v1914_v26 = vsel %vm1913_vm6, %v2295_v0, %v1910_v45  ;;  %vm1927_vm8 = vweird.f32 %v2297_v29 }
 0x833   :  { %v1919_v61 = vsel %vm1916_vm7, %v1918_v63, %v1914_v26  ;;  %vm1928_vm10 = vmor %vm1926_vm9, %vm1927_vm8 }
 0x834   :  { %v1923_v10 = vsub.f32 1.0, %v1922_v23  ;;  %v1936_v40 = vmul.f32 %v1919_v61, %v1880_v2 }
 0x836   :  { %v1924_v56 = vmul.f32 %v2297_v29, %v1923_v10  ;;  %v1938_v52 = vmul.f32 %v1936_v40, %v1894_v57 }
 0x838   :  { %v1925_v16 = vadd.f32 %v2297_v29, %v1924_v56 }
 0x83a   :  { %v1929_v6 = vsel %vm1928_vm10, %v2297_v29, %v1925_v16 }
 0x83b   :  { %v1934_v34 = vsel %vm1931_vm11, %v1933_v53, %v1929_v6 }
 0x83c   :  { %v1937_v33 = vmul.f32 %v1934_v34, %v1882_v41 }
 0x83e   :  { %v1939_v55 = vmul.f32 %v1937_v33, %v1896_v59 }
 0x840   :  { %v1940_v32 = vpack.c.bf16 %v1939_v55, %v1938_v52 }
 0x842   :  { %2017 = vmatmul.bf16.vlgmr.msrb.gmra.mxu3 %v1940_v32 }
 0x8c5   :  { %v2018_v20 = vpop.f32.mrf.mxu3 }
 0x8c6   :  { %v2019_v38 = vadd.f32 %v2263_v13, %v2018_v20 }
 0x8c8   :  { %v2023_v1 = vadd.f32 %v2019_v38, %v3403_v60 }
 0x8ca   :  { %2025 = vst.msk [vmem:[#allocation11] sm:$0xff] %vm121_vm0, %v2023_v1 }
 0x8cd   :  { %v2020_v18 = vpop.f32.mrf.mxu3 }
 0x8ce   :  { %v2021_v25 = vadd.f32 %v2263_v13, %v2020_v18 }
 0x8d0   :  { %v2024_v28 = vadd.f32 %v2021_v25, %v3407_v50 }
 0x8d2   :  { %2026 = vst.msk [vmem:[#allocation11 + $0x8] sm:$0xff] %vm121_vm0, %v2024_v28 }
 0x8d3   :  { %2039 = dma.vmem_to_hbm [thread:$0]  %s2032_s8, 256, %s2034_s13, [#allocation4], %s2458_s21, %s2458_s21, %s2459_s22  }
 0x8d4   :  { %2451 = dma.done.wait [#allocation4], 256  }
 0x8d5   :  { %2452 = vsyncadd [#allocation4], 4294967040 }
 0x8d6   :  { %2044 = vsyncpa [#allocation3], 1 }
 0x8d7   :  { %2045 = vsyncpa [#allocation6], 1 }
 0x8d8   :  { %2046 = vsyncpa [#allocation9], 1 }
 0x8d9   :  { %2047 = vsyncpa [#allocation4], 1 }

</bundles_post_ra>
